<compile_context>
chip_gen: v6e
topology: v6e:2x2x1
jax: 0.10.0
libtpu: 0.0.40
codegen_flags: <defaults>
</compile_context>

<pallas_src>
from functools import partial

import jax
import jax.numpy as jnp
import numpy as np
from jax.experimental import pallas as pl
from jax.experimental.pallas import tpu as pltpu


# ---------------------------------------------------------------------------
# Fused kernel: per-chunk input projection + GRU recurrence
# ---------------------------------------------------------------------------
def _gru_fused_kernel(len_ref, emb_ref, wih_ref, bcomb_ref, whh_ref, bhhn_ref,
                      out_ref, hid_ref, gi_ref, *, unroll_python):
    """
    len_ref  : (Bb, H)      int32  sequence lengths broadcast along lanes
    emb_ref  : (Tc, Bb, E)  f32    embedded inputs for this (batch, time) chunk
    wih_ref  : (E, 3H)      bf16   input->hidden weights, gate order (r, z, n)
    bcomb_ref: (1, 3H)      f32    b_ih + b_hh for the r/z gates
    whh_ref  : (H, 3H)      bf16   hidden->hidden weights, gate order (r, z, n)
    bhhn_ref : (1, H)       f32    hidden bias of the n gate
    out_ref  : (Tc, Bb, H)  f32    per-step outputs (0 past sequence end)
    hid_ref  : (Bb, H)      f32    resident hidden-state carry / final hidden
    gi_ref   : (Tc*Bb, 3H)  f32    VMEM scratch holding the chunk's input projection
    """
    tc = pl.program_id(1)
    Tc, Bb, E = emb_ref.shape
    H = hid_ref.shape[1]

    # Initialize the resident hidden-state carry at the start of each batch chunk.
    @pl.when(tc == 0)
    def _():
        hid_ref[...] = jnp.zeros_like(hid_ref)

    # (1) Fused, hoisted input projection for this T-chunk: one lane-dense
    #     (Tc*Bb, E) x (E, 3H) bf16 MXU matmul, f32 accumulation, bias folded in.
    #     f32 reshape of (Tc, Bb, E) -> (Tc*Bb, E) is tile-exact (Bb % 8 == 0).
    x = emb_ref[...].reshape(Tc * Bb, E).astype(jnp.bfloat16)
    gi_ref[...] = (
        jnp.dot(x, wih_ref[...], preferred_element_type=jnp.float32)
        + bcomb_ref[...]
    )

    # Loop-invariant loads hoisted out of the recurrence.
    lens = len_ref[...]            # (Bb, H) int32
    w_hh = whh_ref[...]            # (H, 3H) bf16 -- loaded once per grid step
    b_hh_n = bhhn_ref[...]         # (1, H)  f32
    t0 = tc * Tc                   # global time offset of this chunk

    def step(t, h):
        start = t * Bb
        if not isinstance(start, int):
            start = pl.multiple_of(start, 8)
        gi_t = gi_ref[pl.ds(start, Bb), :]                      # (Bb, 3H) f32
        # Single fused hidden->hidden matmul: one MXU push per step (bf16 in, f32 acc).
        gh = jnp.dot(h.astype(jnp.bfloat16), w_hh,
                     preferred_element_type=jnp.float32)        # (Bb, 3H) f32
        # Gate math stays f32 (v5e VPU/EUP are f32-only).
        r = jax.nn.sigmoid(gi_t[:, :H] + gh[:, :H])
        z = jax.nn.sigmoid(gi_t[:, H:2 * H] + gh[:, H:2 * H])
        n = jnp.tanh(gi_t[:, 2 * H:] + r * (gh[:, 2 * H:] + b_hh_n))
        h_new = (1.0 - z) * n + z * h
        valid = (t0 + t) < lens                                 # (Bb, H) bool
        h_next = jnp.where(valid, h_new, h)    # freeze state past sequence end
        out_ref[t] = jnp.where(valid, h_new, 0.0).astype(out_ref.dtype)
        return h_next

    h = hid_ref[...]
    if unroll_python:
        for t in range(Tc):
            h = step(t, h)
    else:
        h = jax.lax.fori_loop(0, Tc, step, h, unroll=4)
    hid_ref[...] = h               # carry across T-chunks / final hidden state


# ---------------------------------------------------------------------------
# Encoder forward (Embedding -> Dropout(identity) -> GRU with length masking)
# ---------------------------------------------------------------------------
def encoder_forward(src, src_len, params):
    """src: (T, B) int32, src_len: (B,) int32.
    Returns (outputs (T, B, H), hidden (1, B, H))."""
    emb_table = params["embedding"]                 # (V, E), row 0 zero (padding_idx=0)
    emb = emb_table[src].astype(jnp.float32)        # (T, B, E)  plain-JAX gather (glue)
    # TODO(synk): dropout is identity (eval-mode semantics).

    T, B, E = emb.shape
    H = params["w_hh"].shape[0]
    G3 = 3 * H
    assert B % 8 == 0, "batch must be a multiple of 8 for tile-aligned blocks"

    w_ih = params["w_ih"]                           # (E, 3H), gate order (r, z, n)
    w_hh = params["w_hh"]                           # (H, 3H)
    b_ih = params["b_ih"]                           # (1, 3H)
    b_hh = params["b_hh"]                           # (1, 3H)

    # Fold b_ih, plus b_hh for the r/z gates, into the fused input-projection bias.
    # Only the n gate keeps its hidden bias separate (it sits inside r * (.)).
    b_comb = b_ih + jnp.concatenate(
        [b_hh[:, :2 * H], jnp.zeros((1, H), b_hh.dtype)], axis=1)
    b_hh_n = b_hh[:, 2 * H:]                        # (1, H)

    # Batch chunking: >= 2 chunks lets the "parallel" axis use v7x's 2nd TensorCore;
    # a single chunk on small B avoids per-chunk overhead on single-TC v5e/v6e.
    bb = B // 2 if (B >= 16 and (B // 2) % 8 == 0) else B
    assert B % bb == 0 and (bb % 8 == 0)

    # Time chunking bounds VMEM (nothing scales with full T in VMEM any more) and
    # lets the pipeline prefetch the next emb chunk / write back finished outputs.
    Tc = next(d for d in range(min(T, 32), 0, -1) if T % d == 0)
    n_tc = T // Tc

    # Lengths broadcast along lanes so the validity mask matches h's (Bb, H) shape.
    lens_bh = jnp.broadcast_to(src_len.astype(jnp.int32).reshape(B, 1), (B, H))

    # Explicit scoped-VMEM budget: 2x (pipelined blocks + weights) + GI scratch.
    pipelined = (bb * H * 4) + (Tc * bb * E * 4) + (Tc * bb * H * 4) + (bb * H * 4)
    weights = E * G3 * 2 + G3 * 4 + H * G3 * 2 + H * 4
    scratch = Tc * bb * G3 * 4
    vmem_bytes = int(min(max(2 * (pipelined + weights) + scratch + (4 << 20),
                             16 << 20), 64 << 20))

    # Full unroll only while the chunk's live footprint stays register-file sized.
    unroll_python = (Tc * bb * G3 * 4) <= (256 * 1024)
    kernel = partial(_gru_fused_kernel, unroll_python=unroll_python)

    outputs, hidden = pl.pallas_call(
        kernel,
        out_shape=(
            jax.ShapeDtypeStruct((T, B, H), jnp.float32),
            jax.ShapeDtypeStruct((B, H), jnp.float32),
        ),
        grid_spec=pltpu.PrefetchScalarGridSpec(
            num_scalar_prefetch=0,
            grid=(B // bb, n_tc),                                   # (batch, time)
            in_specs=[
                pl.BlockSpec((bb, H), lambda c, t: (c, 0)),         # lengths
                pl.BlockSpec((Tc, bb, E), lambda c, t: (t, c, 0)),  # embeddings
                pl.BlockSpec((E, G3), lambda c, t: (0, 0)),         # W_ih (bf16)
                pl.BlockSpec((1, G3), lambda c, t: (0, 0)),         # b_ih + b_hh[r,z]
                pl.BlockSpec((H, G3), lambda c, t: (0, 0)),         # W_hh (bf16)
                pl.BlockSpec((1, H), lambda c, t: (0, 0)),          # b_hh (n gate)
            ],
            out_specs=[
                pl.BlockSpec((Tc, bb, H), lambda c, t: (t, c, 0)),  # outputs
                pl.BlockSpec((bb, H), lambda c, t: (c, 0)),         # hidden (resident)
            ],
            scratch_shapes=[pltpu.VMEM((Tc * bb, G3), jnp.float32)],  # GI chunk
        ),
        compiler_params=pltpu.CompilerParams(
            dimension_semantics=("parallel", "arbitrary"),
            vmem_limit_bytes=vmem_bytes),
    )(
        lens_bh,
        emb,
        w_ih.astype(jnp.bfloat16),
        b_comb.astype(jnp.float32),
        w_hh.astype(jnp.bfloat16),
        b_hh_n.astype(jnp.float32),
    )
    return outputs, hidden[None]                    # hidden: (1, B, H)


# ---------------------------------------------------------------------------
# Pure-JAX reference (lax.scan) for correctness checking.
# Uses the same deliberate bf16-MXU-operand / f32-accumulate numerics as the kernel.
# ---------------------------------------------------------------------------
def reference_forward(src, src_len, params):
    emb = params["embedding"][src].astype(jnp.float32)      # (T, B, E)
    T, B, E = emb.shape
    H = params["w_hh"].shape[0]
    w_ih = params["w_ih"].astype(jnp.bfloat16)
    w_hh = params["w_hh"].astype(jnp.bfloat16)
    b_ih = params["b_ih"].astype(jnp.float32)
    b_hh = params["b_hh"].astype(jnp.float32)

    def step(h, xs):
        x, t = xs
        gi = jnp.dot(x.astype(jnp.bfloat16), w_ih,
                     preferred_element_type=jnp.float32) + b_ih
        gh = jnp.dot(h.astype(jnp.bfloat16), w_hh,
                     preferred_element_type=jnp.float32) + b_hh
        r = jax.nn.sigmoid(gi[:, :H] + gh[:, :H])
        z = jax.nn.sigmoid(gi[:, H:2 * H] + gh[:, H:2 * H])
        n = jnp.tanh(gi[:, 2 * H:] + r * gh[:, 2 * H:])
        h_new = (1.0 - z) * n + z * h
        valid = (t < src_len)[:, None]
        h_next = jnp.where(valid, h_new, h)
        out = jnp.where(valid, h_new, 0.0)
        return h_next, out

    h0 = jnp.zeros((B, H), jnp.float32)
    h_last, outs = jax.lax.scan(step, h0, (emb, jnp.arange(T)))
    return outs, h_last[None]


def init_params(key, vocab, emb_dim, hid_dim):
    k1, k2, k3, k4, k5 = jax.random.split(key, 5)
    embedding = 0.1 * jax.random.normal(k1, (vocab, emb_dim), jnp.float32)
    embedding = embedding.at[0].set(0.0)                     # padding_idx = 0
    w_ih = 0.1 * jax.random.normal(k2, (emb_dim, 3 * hid_dim), jnp.float32)
    w_hh = 0.1 * jax.random.normal(k3, (hid_dim, 3 * hid_dim), jnp.float32)
    b_ih = 0.1 * jax.random.normal(k4, (1, 3 * hid_dim), jnp.float32)
    b_hh = 0.1 * jax.random.normal(k5, (1, 3 * hid_dim), jnp.float32)
    return dict(embedding=embedding, w_ih=w_ih, w_hh=w_hh, b_ih=b_ih, b_hh=b_hh)


if __name__ == "__main__":
    # Small shapes consistent with the module: emb=hid=128 (Config), T=8, B=8.
    VOCAB, EMB, HID, T, B = 50, 128, 128, 8, 8

    key = jax.random.PRNGKey(0)
    kp, ks = jax.random.split(key)
    params = init_params(kp, VOCAB, EMB, HID)

    src_len = jnp.array([8, 5, 3, 8, 1, 6, 8, 2], dtype=jnp.int32)      # (B,)
    tokens = jax.random.randint(ks, (T, B), 1, VOCAB, dtype=jnp.int32)  # (T, B)
    t_idx = jnp.arange(T)[:, None]
    src = jnp.where(t_idx < src_len[None, :], tokens, 0)                # pad with 0

    outputs, hidden = encoder_forward(src, src_len, params)
    outputs = jax.block_until_ready(outputs)
    hidden = jax.block_until_ready(hidden)

    ref_out, ref_hid = reference_forward(src, src_len, params)
    np.testing.assert_allclose(np.asarray(outputs), np.asarray(ref_out),
                               rtol=1e-3, atol=1e-3)
    np.testing.assert_allclose(np.asarray(hidden), np.asarray(ref_hid),
                               rtol=1e-3, atol=1e-3)

    print("KERNEL_OK")
</pallas_src>

<mosaic_0001>
module attributes {stable_mosaic.version = 11 : i64} {
  func.func @_gru_fused_kernel(%arg0: i32, %arg1: i32, %arg2: memref<8x128xi32, #tpu.memory_space<vmem>>, %arg3: memref<8x8x128xf32, #tpu.memory_space<vmem>>, %arg4: memref<128x384xbf16, #tpu.memory_space<vmem>>, %arg5: memref<1x384xf32, #tpu.memory_space<vmem>>, %arg6: memref<128x384xbf16, #tpu.memory_space<vmem>>, %arg7: memref<1x128xf32, #tpu.memory_space<vmem>>, %arg8: memref<8x8x128xf32, #tpu.memory_space<vmem>>, %arg9: memref<8x128xf32, #tpu.memory_space<vmem>>, %arg10: memref<64x384xf32, #tpu.memory_space<vmem>>) attributes {dimension_semantics = [#tpu.dimension_semantics<parallel>, #tpu.dimension_semantics<arbitrary>], iteration_bounds = array<i64: 1, 1>, scalar_prefetch = 0 : i64, scratch_operands = 1 : i64, tpu.core_type = #tpu.core_type<tc>, window_params = [{transform_indices = @transform_0, window_bounds = array<i64: 8, 128>}, {transform_indices = @transform_1, window_bounds = array<i64: 8, 8, 128>}, {pipeline_mode = #tpu.pipeline_mode<synchronous>, transform_indices = @transform_2, window_bounds = array<i64: 128, 384>}, {pipeline_mode = #tpu.pipeline_mode<synchronous>, transform_indices = @transform_3, window_bounds = array<i64: 1, 384>}, {pipeline_mode = #tpu.pipeline_mode<synchronous>, transform_indices = @transform_4, window_bounds = array<i64: 128, 384>}, {pipeline_mode = #tpu.pipeline_mode<synchronous>, transform_indices = @transform_5, window_bounds = array<i64: 1, 128>}, {transform_indices = @transform_6, window_bounds = array<i64: 8, 8, 128>}, {transform_indices = @transform_7, window_bounds = array<i64: 8, 128>}]} {
    %c0_i32 = arith.constant 0 : i32
    %0 = arith.cmpi eq, %arg1, %c0_i32 : i32
    %1 = arith.extui %0 : i1 to i32
    %c0_i32_0 = arith.constant 0 : i32
    %2 = arith.cmpi ne, %1, %c0_i32_0 : i32
    scf.if %2 {
      %cst_86 = arith.constant 0.000000e+00 : f32
      %338 = vector.broadcast %cst_86 : f32 to vector<8x128xf32>
      %c0_87 = arith.constant 0 : index
      %c0_88 = arith.constant 0 : index
      %339 = vector.load %arg9[%c0_87, %c0_88] : memref<8x128xf32, #tpu.memory_space<vmem>>, vector<8x128xf32>
      tpu.vector_store %arg9[%c0_87, %c0_88], %338 {strides = array<i32>} : memref<8x128xf32, #tpu.memory_space<vmem>>, vector<8x128xf32>,
    } else {
    }
    %c0 = arith.constant 0 : index
    %c0_1 = arith.constant 0 : index
    %c0_2 = arith.constant 0 : index
    %3 = vector.load %arg3[%c0, %c0_1, %c0_2] : memref<8x8x128xf32, #tpu.memory_space<vmem>>, vector<8x8x128xf32>
    %4 = vector.shape_cast %3 : vector<8x8x128xf32> to vector<64x128xf32>
    %5 = arith.truncf %4 : vector<64x128xf32> to vector<64x128xbf16>
    %c0_3 = arith.constant 0 : index
    %c0_4 = arith.constant 0 : index
    %6 = vector.load %arg4[%c0_3, %c0_4] : memref<128x384xbf16, #tpu.memory_space<vmem>>, vector<128x384xbf16>
    %cst = arith.constant dense<0.000000e+00> : vector<64x384xf32>
    %7 = tpu.matmul %5, %6, %cst {dimension_numbers = #tpu.dot_dimension_numbers<[1], [0], [0], [1], [0, 0, 1, 1], [], []>} : vector<64x128xbf16>, vector<128x384xbf16>, vector<64x384xf32> -> vector<64x384xf32>
    %c0_5 = arith.constant 0 : index
    %c0_6 = arith.constant 0 : index
    %8 = vector.load %arg5[%c0_5, %c0_6] : memref<1x384xf32, #tpu.memory_space<vmem>>, vector<1x384xf32>
    %9 = vector.broadcast %8 : vector<1x384xf32> to vector<64x384xf32>
    %10 = arith.addf %7, %9 : vector<64x384xf32>
    %c0_7 = arith.constant 0 : index
    %c0_8 = arith.constant 0 : index
    %11 = vector.load %arg10[%c0_7, %c0_8] : memref<64x384xf32, #tpu.memory_space<vmem>>, vector<64x384xf32>
    tpu.vector_store %arg10[%c0_7, %c0_8], %10 {strides = array<i32>} : memref<64x384xf32, #tpu.memory_space<vmem>>, vector<64x384xf32>,
    %c0_9 = arith.constant 0 : index
    %c0_10 = arith.constant 0 : index
    %12 = vector.load %arg2[%c0_9, %c0_10] : memref<8x128xi32, #tpu.memory_space<vmem>>, vector<8x128xi32>
    %c0_11 = arith.constant 0 : index
    %c0_12 = arith.constant 0 : index
    %13 = vector.load %arg6[%c0_11, %c0_12] : memref<128x384xbf16, #tpu.memory_space<vmem>>, vector<128x384xbf16>
    %c0_13 = arith.constant 0 : index
    %c0_14 = arith.constant 0 : index
    %14 = vector.load %arg7[%c0_13, %c0_14] : memref<1x128xf32, #tpu.memory_space<vmem>>, vector<1x128xf32>
    %c8_i32 = arith.constant 8 : i32
    %15 = arith.muli %arg1, %c8_i32 : i32
    %c0_15 = arith.constant 0 : index
    %c0_16 = arith.constant 0 : index
    %16 = vector.load %arg9[%c0_15, %c0_16] : memref<8x128xf32, #tpu.memory_space<vmem>>, vector<8x128xf32>
    %c0_17 = arith.constant 0 : index
    %c0_18 = arith.constant 0 : index
    %17 = vector.load %arg10[%c0_17, %c0_18] : memref<64x384xf32, #tpu.memory_space<vmem>>, vector<8x384xf32>
    %18 = arith.truncf %16 : vector<8x128xf32> to vector<8x128xbf16>
    %cst_19 = arith.constant dense<0.000000e+00> : vector<8x384xf32>
    %19 = tpu.matmul %18, %13, %cst_19 {dimension_numbers = #tpu.dot_dimension_numbers<[1], [0], [0], [1], [0, 0, 1, 1], [], []>} : vector<8x128xbf16>, vector<128x384xbf16>, vector<8x384xf32> -> vector<8x384xf32>
    %20 = vector.extract_strided_slice %17 {offsets = [0, 0], sizes = [8, 128], strides = [1, 1]} : vector<8x384xf32> to vector<8x128xf32>
    %21 = vector.extract_strided_slice %19 {offsets = [0, 0], sizes = [8, 128], strides = [1, 1]} : vector<8x384xf32> to vector<8x128xf32>
    %22 = arith.addf %20, %21 : vector<8x128xf32>
    %23 = arith.negf %22 : vector<8x128xf32>
    %24 = math.exp %23 : vector<8x128xf32>
    %cst_20 = arith.constant 1.000000e+00 : f32
    %25 = vector.broadcast %cst_20 : f32 to vector<8x128xf32>
    %26 = arith.addf %25, %24 : vector<8x128xf32>
    %27 = arith.divf %25, %26 : vector<8x128xf32>
    %28 = vector.extract_strided_slice %17 {offsets = [0, 128], sizes = [8, 128], strides = [1, 1]} : vector<8x384xf32> to vector<8x128xf32>
    %29 = vector.extract_strided_slice %19 {offsets = [0, 128], sizes = [8, 128], strides = [1, 1]} : vector<8x384xf32> to vector<8x128xf32>
    %30 = arith.addf %28, %29 : vector<8x128xf32>
    %31 = arith.negf %30 : vector<8x128xf32>
    %32 = math.exp %31 : vector<8x128xf32>
    %cst_21 = arith.constant 1.000000e+00 : f32
    %33 = vector.broadcast %cst_21 : f32 to vector<8x128xf32>
    %34 = arith.addf %33, %32 : vector<8x128xf32>
    %35 = arith.divf %33, %34 : vector<8x128xf32>
    %36 = vector.extract_strided_slice %17 {offsets = [0, 256], sizes = [8, 128], strides = [1, 1]} : vector<8x384xf32> to vector<8x128xf32>
    %37 = vector.extract_strided_slice %19 {offsets = [0, 256], sizes = [8, 128], strides = [1, 1]} : vector<8x384xf32> to vector<8x128xf32>
    %38 = vector.broadcast %14 : vector<1x128xf32> to vector<8x128xf32>
    %39 = arith.addf %37, %38 : vector<8x128xf32>
    %40 = arith.mulf %27, %39 : vector<8x128xf32>
    %41 = arith.addf %36, %40 : vector<8x128xf32>
    %42 = math.tanh %41 : vector<8x128xf32>
    %cst_22 = arith.constant 1.000000e+00 : f32
    %43 = vector.broadcast %cst_22 : f32 to vector<8x128xf32>
    %44 = arith.subf %43, %35 : vector<8x128xf32>
    %45 = arith.mulf %44, %42 : vector<8x128xf32>
    %46 = arith.mulf %35, %16 : vector<8x128xf32>
    %47 = arith.addf %45, %46 : vector<8x128xf32>
    %c0_i32_23 = arith.constant 0 : i32
    %48 = arith.addi %15, %c0_i32_23 : i32
    %49 = vector.broadcast %48 : i32 to vector<8x128xi32>
    %50 = arith.cmpi slt, %49, %12 : vector<8x128xi32>
    %51 = arith.select %50, %47, %16 : vector<8x128xi1>, vector<8x128xf32>
    %cst_24 = arith.constant 0.000000e+00 : f32
    %52 = vector.broadcast %cst_24 : f32 to vector<8x128xf32>
    %53 = arith.select %50, %47, %52 : vector<8x128xi1>, vector<8x128xf32>
    %c0_25 = arith.constant 0 : index
    %c0_26 = arith.constant 0 : index
    %c0_27 = arith.constant 0 : index
    %54 = vector.load %arg8[%c0_25, %c0_26, %c0_27] : memref<8x8x128xf32, #tpu.memory_space<vmem>>, vector<1x8x128xf32>
    %55 = vector.shape_cast %54 : vector<1x8x128xf32> to vector<8x128xf32>
    %56 = vector.shape_cast %53 : vector<8x128xf32> to vector<1x8x128xf32>
    tpu.vector_store %arg8[%c0_25, %c0_26, %c0_27], %56 {strides = array<i32>} : memref<8x8x128xf32, #tpu.memory_space<vmem>>, vector<1x8x128xf32>,
    %c8 = arith.constant 8 : index
    %c0_28 = arith.constant 0 : index
    %57 = vector.load %arg10[%c8, %c0_28] : memref<64x384xf32, #tpu.memory_space<vmem>>, vector<8x384xf32>
    %58 = arith.truncf %51 : vector<8x128xf32> to vector<8x128xbf16>
    %cst_29 = arith.constant dense<0.000000e+00> : vector<8x384xf32>
    %59 = tpu.matmul %58, %13, %cst_29 {dimension_numbers = #tpu.dot_dimension_numbers<[1], [0], [0], [1], [0, 0, 1, 1], [], []>} : vector<8x128xbf16>, vector<128x384xbf16>, vector<8x384xf32> -> vector<8x384xf32>
    %60 = vector.extract_strided_slice %57 {offsets = [0, 0], sizes = [8, 128], strides = [1, 1]} : vector<8x384xf32> to vector<8x128xf32>
    %61 = vector.extract_strided_slice %59 {offsets = [0, 0], sizes = [8, 128], strides = [1, 1]} : vector<8x384xf32> to vector<8x128xf32>
    %62 = arith.addf %60, %61 : vector<8x128xf32>
    %63 = arith.negf %62 : vector<8x128xf32>
    %64 = math.exp %63 : vector<8x128xf32>
    %cst_30 = arith.constant 1.000000e+00 : f32
    %65 = vector.broadcast %cst_30 : f32 to vector<8x128xf32>
    %66 = arith.addf %65, %64 : vector<8x128xf32>
    %67 = arith.divf %65, %66 : vector<8x128xf32>
    %68 = vector.extract_strided_slice %57 {offsets = [0, 128], sizes = [8, 128], strides = [1, 1]} : vector<8x384xf32> to vector<8x128xf32>
    %69 = vector.extract_strided_slice %59 {offsets = [0, 128], sizes = [8, 128], strides = [1, 1]} : vector<8x384xf32> to vector<8x128xf32>
    %70 = arith.addf %68, %69 : vector<8x128xf32>
    %71 = arith.negf %70 : vector<8x128xf32>
    %72 = math.exp %71 : vector<8x128xf32>
    %cst_31 = arith.constant 1.000000e+00 : f32
    %73 = vector.broadcast %cst_31 : f32 to vector<8x128xf32>
    %74 = arith.addf %73, %72 : vector<8x128xf32>
    %75 = arith.divf %73, %74 : vector<8x128xf32>
    %76 = vector.extract_strided_slice %57 {offsets = [0, 256], sizes = [8, 128], strides = [1, 1]} : vector<8x384xf32> to vector<8x128xf32>
    %77 = vector.extract_strided_slice %59 {offsets = [0, 256], sizes = [8, 128], strides = [1, 1]} : vector<8x384xf32> to vector<8x128xf32>
    %78 = vector.broadcast %14 : vector<1x128xf32> to vector<8x128xf32>
    %79 = arith.addf %77, %78 : vector<8x128xf32>
    %80 = arith.mulf %67, %79 : vector<8x128xf32>
    %81 = arith.addf %76, %80 : vector<8x128xf32>
    %82 = math.tanh %81 : vector<8x128xf32>
    %cst_32 = arith.constant 1.000000e+00 : f32
    %83 = vector.broadcast %cst_32 : f32 to vector<8x128xf32>
    %84 = arith.subf %83, %75 : vector<8x128xf32>
    %85 = arith.mulf %84, %82 : vector<8x128xf32>
    %86 = arith.mulf %75, %51 : vector<8x128xf32>
    %87 = arith.addf %85, %86 : vector<8x128xf32>
    %c1_i32 = arith.constant 1 : i32
    %88 = arith.addi %15, %c1_i32 : i32
    %89 = vector.broadcast %88 : i32 to vector<8x128xi32>
    %90 = arith.cmpi slt, %89, %12 : vector<8x128xi32>
    %91 = arith.select %90, %87, %51 : vector<8x128xi1>, vector<8x128xf32>
    %cst_33 = arith.constant 0.000000e+00 : f32
    %92 = vector.broadcast %cst_33 : f32 to vector<8x128xf32>
    %93 = arith.select %90, %87, %92 : vector<8x128xi1>, vector<8x128xf32>
    %c1 = arith.constant 1 : index
    %c0_34 = arith.constant 0 : index
    %c0_35 = arith.constant 0 : index
    %94 = vector.load %arg8[%c1, %c0_34, %c0_35] : memref<8x8x128xf32, #tpu.memory_space<vmem>>, vector<1x8x128xf32>
    %95 = vector.shape_cast %94 : vector<1x8x128xf32> to vector<8x128xf32>
    %96 = vector.shape_cast %93 : vector<8x128xf32> to vector<1x8x128xf32>
    tpu.vector_store %arg8[%c1, %c0_34, %c0_35], %96 {strides = array<i32>} : memref<8x8x128xf32, #tpu.memory_space<vmem>>, vector<1x8x128xf32>,
    %c16 = arith.constant 16 : index
    %c0_36 = arith.constant 0 : index
    %97 = vector.load %arg10[%c16, %c0_36] : memref<64x384xf32, #tpu.memory_space<vmem>>, vector<8x384xf32>
    %98 = arith.truncf %91 : vector<8x128xf32> to vector<8x128xbf16>
    %cst_37 = arith.constant dense<0.000000e+00> : vector<8x384xf32>
    %99 = tpu.matmul %98, %13, %cst_37 {dimension_numbers = #tpu.dot_dimension_numbers<[1], [0], [0], [1], [0, 0, 1, 1], [], []>} : vector<8x128xbf16>, vector<128x384xbf16>, vector<8x384xf32> -> vector<8x384xf32>
    %100 = vector.extract_strided_slice %97 {offsets = [0, 0], sizes = [8, 128], strides = [1, 1]} : vector<8x384xf32> to vector<8x128xf32>
    %101 = vector.extract_strided_slice %99 {offsets = [0, 0], sizes = [8, 128], strides = [1, 1]} : vector<8x384xf32> to vector<8x128xf32>
    %102 = arith.addf %100, %101 : vector<8x128xf32>
    %103 = arith.negf %102 : vector<8x128xf32>
    %104 = math.exp %103 : vector<8x128xf32>
    %cst_38 = arith.constant 1.000000e+00 : f32
    %105 = vector.broadcast %cst_38 : f32 to vector<8x128xf32>
    %106 = arith.addf %105, %104 : vector<8x128xf32>
    %107 = arith.divf %105, %106 : vector<8x128xf32>
    %108 = vector.extract_strided_slice %97 {offsets = [0, 128], sizes = [8, 128], strides = [1, 1]} : vector<8x384xf32> to vector<8x128xf32>
    %109 = vector.extract_strided_slice %99 {offsets = [0, 128], sizes = [8, 128], strides = [1, 1]} : vector<8x384xf32> to vector<8x128xf32>
    %110 = arith.addf %108, %109 : vector<8x128xf32>
    %111 = arith.negf %110 : vector<8x128xf32>
    %112 = math.exp %111 : vector<8x128xf32>
    %cst_39 = arith.constant 1.000000e+00 : f32
    %113 = vector.broadcast %cst_39 : f32 to vector<8x128xf32>
    %114 = arith.addf %113, %112 : vector<8x128xf32>
    %115 = arith.divf %113, %114 : vector<8x128xf32>
    %116 = vector.extract_strided_slice %97 {offsets = [0, 256], sizes = [8, 128], strides = [1, 1]} : vector<8x384xf32> to vector<8x128xf32>
    %117 = vector.extract_strided_slice %99 {offsets = [0, 256], sizes = [8, 128], strides = [1, 1]} : vector<8x384xf32> to vector<8x128xf32>
    %118 = vector.broadcast %14 : vector<1x128xf32> to vector<8x128xf32>
    %119 = arith.addf %117, %118 : vector<8x128xf32>
    %120 = arith.mulf %107, %119 : vector<8x128xf32>
    %121 = arith.addf %116, %120 : vector<8x128xf32>
    %122 = math.tanh %121 : vector<8x128xf32>
    %cst_40 = arith.constant 1.000000e+00 : f32
    %123 = vector.broadcast %cst_40 : f32 to vector<8x128xf32>
    %124 = arith.subf %123, %115 : vector<8x128xf32>
    %125 = arith.mulf %124, %122 : vector<8x128xf32>
    %126 = arith.mulf %115, %91 : vector<8x128xf32>
    %127 = arith.addf %125, %126 : vector<8x128xf32>
    %c2_i32 = arith.constant 2 : i32
    %128 = arith.addi %15, %c2_i32 : i32
    %129 = vector.broadcast %128 : i32 to vector<8x128xi32>
    %130 = arith.cmpi slt, %129, %12 : vector<8x128xi32>
    %131 = arith.select %130, %127, %91 : vector<8x128xi1>, vector<8x128xf32>
    %cst_41 = arith.constant 0.000000e+00 : f32
    %132 = vector.broadcast %cst_41 : f32 to vector<8x128xf32>
    %133 = arith.select %130, %127, %132 : vector<8x128xi1>, vector<8x128xf32>
    %c2 = arith.constant 2 : index
    %c0_42 = arith.constant 0 : index
    %c0_43 = arith.constant 0 : index
    %134 = vector.load %arg8[%c2, %c0_42, %c0_43] : memref<8x8x128xf32, #tpu.memory_space<vmem>>, vector<1x8x128xf32>
    %135 = vector.shape_cast %134 : vector<1x8x128xf32> to vector<8x128xf32>
    %136 = vector.shape_cast %133 : vector<8x128xf32> to vector<1x8x128xf32>
    tpu.vector_store %arg8[%c2, %c0_42, %c0_43], %136 {strides = array<i32>} : memref<8x8x128xf32, #tpu.memory_space<vmem>>, vector<1x8x128xf32>,
    %c24 = arith.constant 24 : index
    %c0_44 = arith.constant 0 : index
    %137 = vector.load %arg10[%c24, %c0_44] : memref<64x384xf32, #tpu.memory_space<vmem>>, vector<8x384xf32>
    %138 = arith.truncf %131 : vector<8x128xf32> to vector<8x128xbf16>
    %cst_45 = arith.constant dense<0.000000e+00> : vector<8x384xf32>
    %139 = tpu.matmul %138, %13, %cst_45 {dimension_numbers = #tpu.dot_dimension_numbers<[1], [0], [0], [1], [0, 0, 1, 1], [], []>} : vector<8x128xbf16>, vector<128x384xbf16>, vector<8x384xf32> -> vector<8x384xf32>
    %140 = vector.extract_strided_slice %137 {offsets = [0, 0], sizes = [8, 128], strides = [1, 1]} : vector<8x384xf32> to vector<8x128xf32>
    %141 = vector.extract_strided_slice %139 {offsets = [0, 0], sizes = [8, 128], strides = [1, 1]} : vector<8x384xf32> to vector<8x128xf32>
    %142 = arith.addf %140, %141 : vector<8x128xf32>
    %143 = arith.negf %142 : vector<8x128xf32>
    %144 = math.exp %143 : vector<8x128xf32>
    %cst_46 = arith.constant 1.000000e+00 : f32
    %145 = vector.broadcast %cst_46 : f32 to vector<8x128xf32>
    %146 = arith.addf %145, %144 : vector<8x128xf32>
    %147 = arith.divf %145, %146 : vector<8x128xf32>
    %148 = vector.extract_strided_slice %137 {offsets = [0, 128], sizes = [8, 128], strides = [1, 1]} : vector<8x384xf32> to vector<8x128xf32>
    %149 = vector.extract_strided_slice %139 {offsets = [0, 128], sizes = [8, 128], strides = [1, 1]} : vector<8x384xf32> to vector<8x128xf32>
    %150 = arith.addf %148, %149 : vector<8x128xf32>
    %151 = arith.negf %150 : vector<8x128xf32>
    %152 = math.exp %151 : vector<8x128xf32>
    %cst_47 = arith.constant 1.000000e+00 : f32
    %153 = vector.broadcast %cst_47 : f32 to vector<8x128xf32>
    %154 = arith.addf %153, %152 : vector<8x128xf32>
    %155 = arith.divf %153, %154 : vector<8x128xf32>
    %156 = vector.extract_strided_slice %137 {offsets = [0, 256], sizes = [8, 128], strides = [1, 1]} : vector<8x384xf32> to vector<8x128xf32>
    %157 = vector.extract_strided_slice %139 {offsets = [0, 256], sizes = [8, 128], strides = [1, 1]} : vector<8x384xf32> to vector<8x128xf32>
    %158 = vector.broadcast %14 : vector<1x128xf32> to vector<8x128xf32>
    %159 = arith.addf %157, %158 : vector<8x128xf32>
    %160 = arith.mulf %147, %159 : vector<8x128xf32>
    %161 = arith.addf %156, %160 : vector<8x128xf32>
    %162 = math.tanh %161 : vector<8x128xf32>
    %cst_48 = arith.constant 1.000000e+00 : f32
    %163 = vector.broadcast %cst_48 : f32 to vector<8x128xf32>
    %164 = arith.subf %163, %155 : vector<8x128xf32>
    %165 = arith.mulf %164, %162 : vector<8x128xf32>
    %166 = arith.mulf %155, %131 : vector<8x128xf32>
    %167 = arith.addf %165, %166 : vector<8x128xf32>
    %c3_i32 = arith.constant 3 : i32
    %168 = arith.addi %15, %c3_i32 : i32
    %169 = vector.broadcast %168 : i32 to vector<8x128xi32>
    %170 = arith.cmpi slt, %169, %12 : vector<8x128xi32>
    %171 = arith.select %170, %167, %131 : vector<8x128xi1>, vector<8x128xf32>
    %cst_49 = arith.constant 0.000000e+00 : f32
    %172 = vector.broadcast %cst_49 : f32 to vector<8x128xf32>
    %173 = arith.select %170, %167, %172 : vector<8x128xi1>, vector<8x128xf32>
    %c3 = arith.constant 3 : index
    %c0_50 = arith.constant 0 : index
    %c0_51 = arith.constant 0 : index
    %174 = vector.load %arg8[%c3, %c0_50, %c0_51] : memref<8x8x128xf32, #tpu.memory_space<vmem>>, vector<1x8x128xf32>
    %175 = vector.shape_cast %174 : vector<1x8x128xf32> to vector<8x128xf32>
    %176 = vector.shape_cast %173 : vector<8x128xf32> to vector<1x8x128xf32>
    tpu.vector_store %arg8[%c3, %c0_50, %c0_51], %176 {strides = array<i32>} : memref<8x8x128xf32, #tpu.memory_space<vmem>>, vector<1x8x128xf32>,
    %c32 = arith.constant 32 : index
    %c0_52 = arith.constant 0 : index
    %177 = vector.load %arg10[%c32, %c0_52] : memref<64x384xf32, #tpu.memory_space<vmem>>, vector<8x384xf32>
    %178 = arith.truncf %171 : vector<8x128xf32> to vector<8x128xbf16>
    %cst_53 = arith.constant dense<0.000000e+00> : vector<8x384xf32>
    %179 = tpu.matmul %178, %13, %cst_53 {dimension_numbers = #tpu.dot_dimension_numbers<[1], [0], [0], [1], [0, 0, 1, 1], [], []>} : vector<8x128xbf16>, vector<128x384xbf16>, vector<8x384xf32> -> vector<8x384xf32>
    %180 = vector.extract_strided_slice %177 {offsets = [0, 0], sizes = [8, 128], strides = [1, 1]} : vector<8x384xf32> to vector<8x128xf32>
    %181 = vector.extract_strided_slice %179 {offsets = [0, 0], sizes = [8, 128], strides = [1, 1]} : vector<8x384xf32> to vector<8x128xf32>
    %182 = arith.addf %180, %181 : vector<8x128xf32>
    %183 = arith.negf %182 : vector<8x128xf32>
    %184 = math.exp %183 : vector<8x128xf32>
    %cst_54 = arith.constant 1.000000e+00 : f32
    %185 = vector.broadcast %cst_54 : f32 to vector<8x128xf32>
    %186 = arith.addf %185, %184 : vector<8x128xf32>
    %187 = arith.divf %185, %186 : vector<8x128xf32>
    %188 = vector.extract_strided_slice %177 {offsets = [0, 128], sizes = [8, 128], strides = [1, 1]} : vector<8x384xf32> to vector<8x128xf32>
    %189 = vector.extract_strided_slice %179 {offsets = [0, 128], sizes = [8, 128], strides = [1, 1]} : vector<8x384xf32> to vector<8x128xf32>
    %190 = arith.addf %188, %189 : vector<8x128xf32>
    %191 = arith.negf %190 : vector<8x128xf32>
    %192 = math.exp %191 : vector<8x128xf32>
    %cst_55 = arith.constant 1.000000e+00 : f32
    %193 = vector.broadcast %cst_55 : f32 to vector<8x128xf32>
    %194 = arith.addf %193, %192 : vector<8x128xf32>
    %195 = arith.divf %193, %194 : vector<8x128xf32>
    %196 = vector.extract_strided_slice %177 {offsets = [0, 256], sizes = [8, 128], strides = [1, 1]} : vector<8x384xf32> to vector<8x128xf32>
    %197 = vector.extract_strided_slice %179 {offsets = [0, 256], sizes = [8, 128], strides = [1, 1]} : vector<8x384xf32> to vector<8x128xf32>
    %198 = vector.broadcast %14 : vector<1x128xf32> to vector<8x128xf32>
    %199 = arith.addf %197, %198 : vector<8x128xf32>
    %200 = arith.mulf %187, %199 : vector<8x128xf32>
    %201 = arith.addf %196, %200 : vector<8x128xf32>
    %202 = math.tanh %201 : vector<8x128xf32>
    %cst_56 = arith.constant 1.000000e+00 : f32
    %203 = vector.broadcast %cst_56 : f32 to vector<8x128xf32>
    %204 = arith.subf %203, %195 : vector<8x128xf32>
    %205 = arith.mulf %204, %202 : vector<8x128xf32>
    %206 = arith.mulf %195, %171 : vector<8x128xf32>
    %207 = arith.addf %205, %206 : vector<8x128xf32>
    %c4_i32 = arith.constant 4 : i32
    %208 = arith.addi %15, %c4_i32 : i32
    %209 = vector.broadcast %208 : i32 to vector<8x128xi32>
    %210 = arith.cmpi slt, %209, %12 : vector<8x128xi32>
    %211 = arith.select %210, %207, %171 : vector<8x128xi1>, vector<8x128xf32>
    %cst_57 = arith.constant 0.000000e+00 : f32
    %212 = vector.broadcast %cst_57 : f32 to vector<8x128xf32>
    %213 = arith.select %210, %207, %212 : vector<8x128xi1>, vector<8x128xf32>
    %c4 = arith.constant 4 : index
    %c0_58 = arith.constant 0 : index
    %c0_59 = arith.constant 0 : index
    %214 = vector.load %arg8[%c4, %c0_58, %c0_59] : memref<8x8x128xf32, #tpu.memory_space<vmem>>, vector<1x8x128xf32>
    %215 = vector.shape_cast %214 : vector<1x8x128xf32> to vector<8x128xf32>
    %216 = vector.shape_cast %213 : vector<8x128xf32> to vector<1x8x128xf32>
    tpu.vector_store %arg8[%c4, %c0_58, %c0_59], %216 {strides = array<i32>} : memref<8x8x128xf32, #tpu.memory_space<vmem>>, vector<1x8x128xf32>,
    %c40 = arith.constant 40 : index
    %c0_60 = arith.constant 0 : index
    %217 = vector.load %arg10[%c40, %c0_60] : memref<64x384xf32, #tpu.memory_space<vmem>>, vector<8x384xf32>
    %218 = arith.truncf %211 : vector<8x128xf32> to vector<8x128xbf16>
    %cst_61 = arith.constant dense<0.000000e+00> : vector<8x384xf32>
    %219 = tpu.matmul %218, %13, %cst_61 {dimension_numbers = #tpu.dot_dimension_numbers<[1], [0], [0], [1], [0, 0, 1, 1], [], []>} : vector<8x128xbf16>, vector<128x384xbf16>, vector<8x384xf32> -> vector<8x384xf32>
    %220 = vector.extract_strided_slice %217 {offsets = [0, 0], sizes = [8, 128], strides = [1, 1]} : vector<8x384xf32> to vector<8x128xf32>
    %221 = vector.extract_strided_slice %219 {offsets = [0, 0], sizes = [8, 128], strides = [1, 1]} : vector<8x384xf32> to vector<8x128xf32>
    %222 = arith.addf %220, %221 : vector<8x128xf32>
    %223 = arith.negf %222 : vector<8x128xf32>
    %224 = math.exp %223 : vector<8x128xf32>
    %cst_62 = arith.constant 1.000000e+00 : f32
    %225 = vector.broadcast %cst_62 : f32 to vector<8x128xf32>
    %226 = arith.addf %225, %224 : vector<8x128xf32>
    %227 = arith.divf %225, %226 : vector<8x128xf32>
    %228 = vector.extract_strided_slice %217 {offsets = [0, 128], sizes = [8, 128], strides = [1, 1]} : vector<8x384xf32> to vector<8x128xf32>
    %229 = vector.extract_strided_slice %219 {offsets = [0, 128], sizes = [8, 128], strides = [1, 1]} : vector<8x384xf32> to vector<8x128xf32>
    %230 = arith.addf %228, %229 : vector<8x128xf32>
    %231 = arith.negf %230 : vector<8x128xf32>
    %232 = math.exp %231 : vector<8x128xf32>
    %cst_63 = arith.constant 1.000000e+00 : f32
    %233 = vector.broadcast %cst_63 : f32 to vector<8x128xf32>
    %234 = arith.addf %233, %232 : vector<8x128xf32>
    %235 = arith.divf %233, %234 : vector<8x128xf32>
    %236 = vector.extract_strided_slice %217 {offsets = [0, 256], sizes = [8, 128], strides = [1, 1]} : vector<8x384xf32> to vector<8x128xf32>
    %237 = vector.extract_strided_slice %219 {offsets = [0, 256], sizes = [8, 128], strides = [1, 1]} : vector<8x384xf32> to vector<8x128xf32>
    %238 = vector.broadcast %14 : vector<1x128xf32> to vector<8x128xf32>
    %239 = arith.addf %237, %238 : vector<8x128xf32>
    %240 = arith.mulf %227, %239 : vector<8x128xf32>
    %241 = arith.addf %236, %240 : vector<8x128xf32>
    %242 = math.tanh %241 : vector<8x128xf32>
    %cst_64 = arith.constant 1.000000e+00 : f32
    %243 = vector.broadcast %cst_64 : f32 to vector<8x128xf32>
    %244 = arith.subf %243, %235 : vector<8x128xf32>
    %245 = arith.mulf %244, %242 : vector<8x128xf32>
    %246 = arith.mulf %235, %211 : vector<8x128xf32>
    %247 = arith.addf %245, %246 : vector<8x128xf32>
    %c5_i32 = arith.constant 5 : i32
    %248 = arith.addi %15, %c5_i32 : i32
    %249 = vector.broadcast %248 : i32 to vector<8x128xi32>
    %250 = arith.cmpi slt, %249, %12 : vector<8x128xi32>
    %251 = arith.select %250, %247, %211 : vector<8x128xi1>, vector<8x128xf32>
    %cst_65 = arith.constant 0.000000e+00 : f32
    %252 = vector.broadcast %cst_65 : f32 to vector<8x128xf32>
    %253 = arith.select %250, %247, %252 : vector<8x128xi1>, vector<8x128xf32>
    %c5 = arith.constant 5 : index
    %c0_66 = arith.constant 0 : index
    %c0_67 = arith.constant 0 : index
    %254 = vector.load %arg8[%c5, %c0_66, %c0_67] : memref<8x8x128xf32, #tpu.memory_space<vmem>>, vector<1x8x128xf32>
    %255 = vector.shape_cast %254 : vector<1x8x128xf32> to vector<8x128xf32>
    %256 = vector.shape_cast %253 : vector<8x128xf32> to vector<1x8x128xf32>
    tpu.vector_store %arg8[%c5, %c0_66, %c0_67], %256 {strides = array<i32>} : memref<8x8x128xf32, #tpu.memory_space<vmem>>, vector<1x8x128xf32>,
    %c48 = arith.constant 48 : index
    %c0_68 = arith.constant 0 : index
    %257 = vector.load %arg10[%c48, %c0_68] : memref<64x384xf32, #tpu.memory_space<vmem>>, vector<8x384xf32>
    %258 = arith.truncf %251 : vector<8x128xf32> to vector<8x128xbf16>
    %cst_69 = arith.constant dense<0.000000e+00> : vector<8x384xf32>
    %259 = tpu.matmul %258, %13, %cst_69 {dimension_numbers = #tpu.dot_dimension_numbers<[1], [0], [0], [1], [0, 0, 1, 1], [], []>} : vector<8x128xbf16>, vector<128x384xbf16>, vector<8x384xf32> -> vector<8x384xf32>
    %260 = vector.extract_strided_slice %257 {offsets = [0, 0], sizes = [8, 128], strides = [1, 1]} : vector<8x384xf32> to vector<8x128xf32>
    %261 = vector.extract_strided_slice %259 {offsets = [0, 0], sizes = [8, 128], strides = [1, 1]} : vector<8x384xf32> to vector<8x128xf32>
    %262 = arith.addf %260, %261 : vector<8x128xf32>
    %263 = arith.negf %262 : vector<8x128xf32>
    %264 = math.exp %263 : vector<8x128xf32>
    %cst_70 = arith.constant 1.000000e+00 : f32
    %265 = vector.broadcast %cst_70 : f32 to vector<8x128xf32>
    %266 = arith.addf %265, %264 : vector<8x128xf32>
    %267 = arith.divf %265, %266 : vector<8x128xf32>
    %268 = vector.extract_strided_slice %257 {offsets = [0, 128], sizes = [8, 128], strides = [1, 1]} : vector<8x384xf32> to vector<8x128xf32>
    %269 = vector.extract_strided_slice %259 {offsets = [0, 128], sizes = [8, 128], strides = [1, 1]} : vector<8x384xf32> to vector<8x128xf32>
    %270 = arith.addf %268, %269 : vector<8x128xf32>
    %271 = arith.negf %270 : vector<8x128xf32>
    %272 = math.exp %271 : vector<8x128xf32>
    %cst_71 = arith.constant 1.000000e+00 : f32
    %273 = vector.broadcast %cst_71 : f32 to vector<8x128xf32>
    %274 = arith.addf %273, %272 : vector<8x128xf32>
    %275 = arith.divf %273, %274 : vector<8x128xf32>
    %276 = vector.extract_strided_slice %257 {offsets = [0, 256], sizes = [8, 128], strides = [1, 1]} : vector<8x384xf32> to vector<8x128xf32>
    %277 = vector.extract_strided_slice %259 {offsets = [0, 256], sizes = [8, 128], strides = [1, 1]} : vector<8x384xf32> to vector<8x128xf32>
    %278 = vector.broadcast %14 : vector<1x128xf32> to vector<8x128xf32>
    %279 = arith.addf %277, %278 : vector<8x128xf32>
    %280 = arith.mulf %267, %279 : vector<8x128xf32>
    %281 = arith.addf %276, %280 : vector<8x128xf32>
    %282 = math.tanh %281 : vector<8x128xf32>
    %cst_72 = arith.constant 1.000000e+00 : f32
    %283 = vector.broadcast %cst_72 : f32 to vector<8x128xf32>
    %284 = arith.subf %283, %275 : vector<8x128xf32>
    %285 = arith.mulf %284, %282 : vector<8x128xf32>
    %286 = arith.mulf %275, %251 : vector<8x128xf32>
    %287 = arith.addf %285, %286 : vector<8x128xf32>
    %c6_i32 = arith.constant 6 : i32
    %288 = arith.addi %15, %c6_i32 : i32
    %289 = vector.broadcast %288 : i32 to vector<8x128xi32>
    %290 = arith.cmpi slt, %289, %12 : vector<8x128xi32>
    %291 = arith.select %290, %287, %251 : vector<8x128xi1>, vector<8x128xf32>
    %cst_73 = arith.constant 0.000000e+00 : f32
    %292 = vector.broadcast %cst_73 : f32 to vector<8x128xf32>
    %293 = arith.select %290, %287, %292 : vector<8x128xi1>, vector<8x128xf32>
    %c6 = arith.constant 6 : index
    %c0_74 = arith.constant 0 : index
    %c0_75 = arith.constant 0 : index
    %294 = vector.load %arg8[%c6, %c0_74, %c0_75] : memref<8x8x128xf32, #tpu.memory_space<vmem>>, vector<1x8x128xf32>
    %295 = vector.shape_cast %294 : vector<1x8x128xf32> to vector<8x128xf32>
    %296 = vector.shape_cast %293 : vector<8x128xf32> to vector<1x8x128xf32>
    tpu.vector_store %arg8[%c6, %c0_74, %c0_75], %296 {strides = array<i32>} : memref<8x8x128xf32, #tpu.memory_space<vmem>>, vector<1x8x128xf32>,
    %c56 = arith.constant 56 : index
    %c0_76 = arith.constant 0 : index
    %297 = vector.load %arg10[%c56, %c0_76] : memref<64x384xf32, #tpu.memory_space<vmem>>, vector<8x384xf32>
    %298 = arith.truncf %291 : vector<8x128xf32> to vector<8x128xbf16>
    %cst_77 = arith.constant dense<0.000000e+00> : vector<8x384xf32>
    %299 = tpu.matmul %298, %13, %cst_77 {dimension_numbers = #tpu.dot_dimension_numbers<[1], [0], [0], [1], [0, 0, 1, 1], [], []>} : vector<8x128xbf16>, vector<128x384xbf16>, vector<8x384xf32> -> vector<8x384xf32>
    %300 = vector.extract_strided_slice %297 {offsets = [0, 0], sizes = [8, 128], strides = [1, 1]} : vector<8x384xf32> to vector<8x128xf32>
    %301 = vector.extract_strided_slice %299 {offsets = [0, 0], sizes = [8, 128], strides = [1, 1]} : vector<8x384xf32> to vector<8x128xf32>
    %302 = arith.addf %300, %301 : vector<8x128xf32>
    %303 = arith.negf %302 : vector<8x128xf32>
    %304 = math.exp %303 : vector<8x128xf32>
    %cst_78 = arith.constant 1.000000e+00 : f32
    %305 = vector.broadcast %cst_78 : f32 to vector<8x128xf32>
    %306 = arith.addf %305, %304 : vector<8x128xf32>
    %307 = arith.divf %305, %306 : vector<8x128xf32>
    %308 = vector.extract_strided_slice %297 {offsets = [0, 128], sizes = [8, 128], strides = [1, 1]} : vector<8x384xf32> to vector<8x128xf32>
    %309 = vector.extract_strided_slice %299 {offsets = [0, 128], sizes = [8, 128], strides = [1, 1]} : vector<8x384xf32> to vector<8x128xf32>
    %310 = arith.addf %308, %309 : vector<8x128xf32>
    %311 = arith.negf %310 : vector<8x128xf32>
    %312 = math.exp %311 : vector<8x128xf32>
    %cst_79 = arith.constant 1.000000e+00 : f32
    %313 = vector.broadcast %cst_79 : f32 to vector<8x128xf32>
    %314 = arith.addf %313, %312 : vector<8x128xf32>
    %315 = arith.divf %313, %314 : vector<8x128xf32>
    %316 = vector.extract_strided_slice %297 {offsets = [0, 256], sizes = [8, 128], strides = [1, 1]} : vector<8x384xf32> to vector<8x128xf32>
    %317 = vector.extract_strided_slice %299 {offsets = [0, 256], sizes = [8, 128], strides = [1, 1]} : vector<8x384xf32> to vector<8x128xf32>
    %318 = vector.broadcast %14 : vector<1x128xf32> to vector<8x128xf32>
    %319 = arith.addf %317, %318 : vector<8x128xf32>
    %320 = arith.mulf %307, %319 : vector<8x128xf32>
    %321 = arith.addf %316, %320 : vector<8x128xf32>
    %322 = math.tanh %321 : vector<8x128xf32>
    %cst_80 = arith.constant 1.000000e+00 : f32
    %323 = vector.broadcast %cst_80 : f32 to vector<8x128xf32>
    %324 = arith.subf %323, %315 : vector<8x128xf32>
    %325 = arith.mulf %324, %322 : vector<8x128xf32>
    %326 = arith.mulf %315, %291 : vector<8x128xf32>
    %327 = arith.addf %325, %326 : vector<8x128xf32>
    %c7_i32 = arith.constant 7 : i32
    %328 = arith.addi %15, %c7_i32 : i32
    %329 = vector.broadcast %328 : i32 to vector<8x128xi32>
    %330 = arith.cmpi slt, %329, %12 : vector<8x128xi32>
    %331 = arith.select %330, %327, %291 : vector<8x128xi1>, vector<8x128xf32>
    %cst_81 = arith.constant 0.000000e+00 : f32
    %332 = vector.broadcast %cst_81 : f32 to vector<8x128xf32>
    %333 = arith.select %330, %327, %332 : vector<8x128xi1>, vector<8x128xf32>
    %c7 = arith.constant 7 : index
    %c0_82 = arith.constant 0 : index
    %c0_83 = arith.constant 0 : index
    %334 = vector.load %arg8[%c7, %c0_82, %c0_83] : memref<8x8x128xf32, #tpu.memory_space<vmem>>, vector<1x8x128xf32>
    %335 = vector.shape_cast %334 : vector<1x8x128xf32> to vector<8x128xf32>
    %336 = vector.shape_cast %333 : vector<8x128xf32> to vector<1x8x128xf32>
    tpu.vector_store %arg8[%c7, %c0_82, %c0_83], %336 {strides = array<i32>} : memref<8x8x128xf32, #tpu.memory_space<vmem>>, vector<1x8x128xf32>,
    %c0_84 = arith.constant 0 : index
    %c0_85 = arith.constant 0 : index
    %337 = vector.load %arg9[%c0_84, %c0_85] : memref<8x128xf32, #tpu.memory_space<vmem>>, vector<8x128xf32>
    tpu.vector_store %arg9[%c0_84, %c0_85], %331 {strides = array<i32>} : memref<8x128xf32, #tpu.memory_space<vmem>>, vector<8x128xf32>,
    return
  }
  func.func @transform_0(%arg0: i32, %arg1: i32) -> (i32, i32) {
    %c0_i32 = arith.constant 0 : i32
    %c0_i32_0 = arith.constant 0 : i32
    return %arg0, %c0_i32 : i32, i32
  }
  func.func @transform_1(%arg0: i32, %arg1: i32) -> (i32, i32, i32) {
    %c0_i32 = arith.constant 0 : i32
    %c0_i32_0 = arith.constant 0 : i32
    return %arg1, %arg0, %c0_i32 : i32, i32, i32
  }
  func.func @transform_2(%arg0: i32, %arg1: i32) -> (i32, i32) {
    %c0_i32 = arith.constant 0 : i32
    %c0_i32_0 = arith.constant 0 : i32
    %c0_i32_1 = arith.constant 0 : i32
    return %c0_i32, %c0_i32_0 : i32, i32
  }
  func.func @transform_3(%arg0: i32, %arg1: i32) -> (i32, i32) {
    %c0_i32 = arith.constant 0 : i32
    %c0_i32_0 = arith.constant 0 : i32
    %c0_i32_1 = arith.constant 0 : i32
    return %c0_i32, %c0_i32_0 : i32, i32
  }
  func.func @transform_4(%arg0: i32, %arg1: i32) -> (i32, i32) {
    %c0_i32 = arith.constant 0 : i32
    %c0_i32_0 = arith.constant 0 : i32
    %c0_i32_1 = arith.constant 0 : i32
    return %c0_i32, %c0_i32_0 : i32, i32
  }
  func.func @transform_5(%arg0: i32, %arg1: i32) -> (i32, i32) {
    %c0_i32 = arith.constant 0 : i32
    %c0_i32_0 = arith.constant 0 : i32
    %c0_i32_1 = arith.constant 0 : i32
    return %c0_i32, %c0_i32_0 : i32, i32
  }
  func.func @transform_6(%arg0: i32, %arg1: i32) -> (i32, i32, i32) {
    %c0_i32 = arith.constant 0 : i32
    %c0_i32_0 = arith.constant 0 : i32
    return %arg1, %arg0, %c0_i32 : i32, i32, i32
  }
  func.func @transform_7(%arg0: i32, %arg1: i32) -> (i32, i32) {
    %c0_i32 = arith.constant 0 : i32
    %c0_i32_0 = arith.constant 0 : i32
    return %arg0, %c0_i32 : i32, i32
  }
}

</mosaic_0001>

<bundles_post_ra>
// kernel: tpu_custom_call.1
= control target key start
LH: loop header
LB: loop body
LE: loop exit
PB: predicated region body
PF: predicated region fallthrough
CT: control target
= control target key end

     0   :  { %13 = vsyncpa [#allocation4], 0  ;;  %s2738_s0 = inlined_call_operand.hbm [shape: s32[8,128], index: 0, kind: input, shape index: {}]   ;;  %s2739_s1 = inlined_call_operand.hbm [shape: f32[8,8,128], index: 1, kind: input, shape index: {}]   ;;  %s2740_s2 = inlined_call_operand.hbm [shape: bf16[128,384], index: 2, kind: input, shape index: {}]   ;;  %s2741_s3 = inlined_call_operand.vmem [shape: f32[1,384], index: 3, kind: input, shape index: {}]   ;;  %s2742_s4 = inlined_call_operand.hbm [shape: bf16[128,384], index: 4, kind: input, shape index: {}]   ;;  %s2743_s5 = inlined_call_operand.vmem [shape: f32[1,128], index: 5, kind: input, shape index: {}]   ;;  %s2744_s6 = inlined_call_operand.hbm [shape: f32[8,8,128], index: 6, kind: output, shape index: {0}]   ;;  %s2745_s7 = inlined_call_operand.hbm [shape: f32[8,128], index: 7, kind: output, shape index: {1}]  }
   0x1   :  { %14 = vsyncpa [#allocation7], 0 }
   0x2   :  { %15 = vsyncpa [#allocation10], 0 }
   0x3   :  { %16 = vsyncpa [#allocation5], 0 }
   0x4   :  { %17 = vsyncpa [#allocation13], 0  ;;  %s2209_s24 = smov [#allocation6]  }
   0x5   :  { %s33_s25 = sshll.u32 %s2209_s24, 4  ;;  %s34_s25 = int_to_ptr.vmem [resolvable:$true] %s33_s25 }
   0x6   :  { %s2087_s26 = scalar_lea.vmem %s34_s25, 1024  ;;  %p2092_p1 = scmp.lt.s32.totalorder %s34_s25, %s34_s25 }
   0x7   :  { %p2088_p0 = scmp.ne.s32.totalorder %s34_s25, %s2087_s26  ;;  %p2093_p2 = scmp.lt.s32.totalorder %s2087_s26, %s2087_s26 }
   0x9   :  { %p2094_p3 = por %p2093_p2, %p2092_p1 }
   0xb   :  { %p2095_p4 = pnand %p2094_p3, %p2088_p0 }
   0xd   :  { %2098 = shalt.err (!%p2095_p4)
}
   0xe   :  { %s2210_s27 = smov 128   ;;  %s2211_s28 = smov 8  }
   0xf   :  { %39 = dma.hbm_to_vmem [thread:$0]  %s2739_s1, 1024, %s34_s25, [#allocation7], %s2210_s27, %s2210_s27, %s2211_s28  }
  0x10   :  { %s2212_s8 = smov [#allocation3]   ;;  %s2213_s10 = smov [#allocation8]  }
  0x11   :  { %s24_s9 = sshll.u32 %s2212_s8, 4  ;;  %s45_s11 = sshll.u32 %s2213_s10, 4  ;;  %s25_s9 = int_to_ptr.vmem [resolvable:$true] %s24_s9  ;;  %s46_s11 = int_to_ptr.vmem [resolvable:$true] %s45_s11 }
  0x12   :  { %s2107_s12 = scalar_lea.vmem %s25_s9, 128  ;;  %p2112_p6 = scmp.lt.s32.totalorder %s25_s9, %s25_s9 }
  0x13   :  { %p2108_p5 = scmp.ne.s32.totalorder %s25_s9, %s2107_s12  ;;  %p2113_p7 = scmp.lt.s32.totalorder %s2107_s12, %s2107_s12 }
  0x15   :  { %p2114_p8 = por %p2113_p7, %p2112_p6 }
  0x17   :  { %p2115_p9 = pnand %p2114_p8, %p2108_p5 }
  0x19   :  { %2118 = shalt.err (!%p2115_p9)
}
  0x1a   :  { %27 = dma.hbm_to_vmem [thread:$0]  %s2738_s0, 128, %s25_s9, [#allocation4]  }
  0x1b   :  { %s2127_s15 = scalar_lea.vmem %s46_s11, 3072  ;;  %p2132_p11 = scmp.lt.s32.totalorder %s46_s11, %s46_s11 }
  0x1c   :  { %p2128_p10 = scmp.ne.s32.totalorder %s46_s11, %s2127_s15  ;;  %p2133_p12 = scmp.lt.s32.totalorder %s2127_s15, %s2127_s15 }
  0x1e   :  { %p2134_p13 = por %p2133_p12, %p2132_p11 }
  0x20   :  { %p2135_p0 = pnand %p2134_p13, %p2128_p10 }
  0x22   :  { %2138 = shalt.err (!%p2135_p0)
}
  0x23   :  { %s2214_s1 = smov 192   ;;  %s2215_s16 = smov 12  }
  0x24   :  { %51 = dma.hbm_to_vmem [thread:$0]  %s2740_s2, 3072, %s46_s11, [#allocation7], %s2214_s1, %s2214_s1, %s2215_s16  }
  0x25   :  { %s2216_s19 = smov [#allocation9]  }
  0x26   :  { %s59_s20 = sshll.u32 %s2216_s19, 4  ;;  %s60_s20 = int_to_ptr.vmem [resolvable:$true] %s59_s20 }
  0x27   :  { %s2147_s21 = scalar_lea.vmem %s60_s20, 3072  ;;  %p2152_p2 = scmp.lt.s32.totalorder %s60_s20, %s60_s20 }
  0x28   :  { %p2148_p1 = scmp.ne.s32.totalorder %s60_s20, %s2147_s21  ;;  %p2153_p3 = scmp.lt.s32.totalorder %s2147_s21, %s2147_s21 }
  0x2a   :  { %p2154_p4 = por %p2153_p3, %p2152_p2 }
  0x2c   :  { %p2155_p5 = pnand %p2154_p4, %p2148_p1 }
  0x2e   :  { %2158 = shalt.err (!%p2155_p5)
}
  0x2f   :  { %65 = dma.hbm_to_vmem [thread:$0]  %s2742_s4, 3072, %s60_s20, [#allocation10], %s2214_s1, %s2214_s1, %s2215_s16  }
  0x30   :  { %2199 = dma.done.wait [#allocation4], 128  }
  0x31   :  { %2200 = vsyncadd [#allocation4], 4294967168 }
  0x32   :  { %2201 = dma.done.wait [#allocation7], 4096  }
  0x33   :  { %2202 = vsyncadd [#allocation7], 4294963200 }
  0x34   :  { %2203 = dma.done.wait [#allocation10], 3072  }
  0x35   :  { %2204 = vsyncadd [#allocation10], 4294964224  ;;  %v2746_v0 = vmov 0   ;;  %v1905_v1 = vld [vmem:[#allocation8 + $0xac] ss:$12 sps:$4 sm:$0xff]   ;;  %v86_v12 = vld [vmem:[#allocation6] sm:$0xff]  ;;  %v132_v63 = vlaneseq }
  0x36   :  { %307 = vmatprep.mubr.bf16.mxu0 %v2746_v0  ;;  %v1907_v2 = vld [vmem:[#allocation8 + $0xa8] ss:$12 sps:$4 sm:$0xff]   ;;  %275 = vmatprep.subr.bf16.mxu0 %v1905_v1  ;;  %v1910_v4 = vld [vmem:[#allocation8 + $0x90] ss:$12 sps:$4 sm:$0xff]   ;;  %v1913_v6 = vld [vmem:[#allocation8 + $0x78] ss:$12 sps:$4 sm:$0xff]  }
  0x37   :  { %v1908_v3 = vld [vmem:[#allocation8 + $0x94] ss:$12 sps:$4 sm:$0xff]   ;;  %276 = vmatpush1.bf16.msra.mxu0 %v1907_v2  ;;  %v1911_v5 = vld [vmem:[#allocation8 + $0x7c] ss:$12 sps:$4 sm:$0xff]   ;;  %v1914_v7 = vld [vmem:[#allocation8 + $0x64] ss:$12 sps:$4 sm:$0xff]  }
  0x38   :  { %277 = vmatprep.subr.bf16.mxu0 %v1908_v3  ;;  %v1926_v8 = vld [vmem:[#allocation8 + $0xb0] ss:$12 sps:$4 sm:$0xff]   ;;  %v1916_v9 = vld [vmem:[#allocation8 + $0x60] ss:$12 sps:$4 sm:$0xff]   ;;  %v1930_v11 = vld [vmem:[#allocation8 + $0x98] ss:$12 sps:$4 sm:$0xff]  }
  0x39   :  { %v1917_v10 = vld [vmem:[#allocation8 + $0x4c] ss:$12 sps:$4 sm:$0xff]   ;;  %1708 = vmatprep.subr.bf16.mxu1 %v1926_v8  ;;  %v1919_v14 = vld [vmem:[#allocation8 + $0x48] ss:$12 sps:$4 sm:$0xff]   ;;  %v1922_v19 = vld [vmem:[#allocation8 + $0x30] ss:$12 sps:$4 sm:$0xff]  }
  0x3a   :  { %1709 = vmatpush3.bf16.msra.mxu1 %v1926_v8  ;;  %v87_v13 = vld [vmem:[#allocation6 + $0x8] sm:$0xff]  ;;  %v1920_v17 = vld [vmem:[#allocation8 + $0x34] ss:$12 sps:$4 sm:$0xff]   ;;  %v1942_v21 = vld [vmem:[#allocation8 + $0x50] ss:$12 sps:$4 sm:$0xff]   ;;  %v2748_v41 = vmov 0.0  }
  0x3b   :  { %278 = vmatpush1.bf16.msra.mxu0 %v1910_v4  ;;  %1710 = vmatprep.subr.bf16.mxu1 %v1930_v11  ;;  %v94_v15 = vpack.c.bf16 %v87_v13, %v86_v12  ;;  %v1934_v16 = vld [vmem:[#allocation8 + $0x80] ss:$12 sps:$4 sm:$0xff]   ;;  %v1938_v18 = vld [vmem:[#allocation8 + $0x68] ss:$12 sps:$4 sm:$0xff]   ;;  %v1925_v22 = vld [vmem:[#allocation8 + $0x18] ss:$12 sps:$4 sm:$0xff]  }
  0x3c   :  { %279 = vmatprep.subr.bf16.mxu0 %v1911_v5  ;;  %v1923_v20 = vld [vmem:[#allocation8 + $0x1c] ss:$12 sps:$4 sm:$0xff]   ;;  %v1927_v23 = vld [vmem:[#allocation8 + $0x4] ss:$12 sps:$4 sm:$0xff]   ;;  %v1929_v25 = vld [vmem:[#allocation8] ss:$12 sps:$4 sm:$0xff]  }
  0x3d   :  { %1724 = vmatprep.mubr.bf16.mxu1 %v94_v15  ;;  %v1946_v24 = vld [vmem:[#allocation8 + $0x38] ss:$12 sps:$4 sm:$0xff]   ;;  %v1950_v27 = vld [vmem:[#allocation8 + $0x20] ss:$12 sps:$4 sm:$0xff]   ;;  %v2281_v28 = vld [vmem:[#allocation9 + $0xa8] ss:$12 sps:$4 sm:$0xff]  }
  0x3e   :  { %1711 = vmatpush3.bf16.msra.mxu1 %v1930_v11  ;;  %v2279_v26 = vld [vmem:[#allocation9 + $0xac] ss:$12 sps:$4 sm:$0xff]   ;;  %v2284_v29 = vld [vmem:[#allocation9 + $0x94] ss:$12 sps:$4 sm:$0xff]   ;;  %v2286_v30 = vld [vmem:[#allocation9 + $0x90] ss:$12 sps:$4 sm:$0xff]  }
  0x3f   :  { %280 = vmatpush1.bf16.msra.mxu0 %v1913_v6  ;;  %1712 = vmatprep.subr.bf16.mxu1 %v1934_v16  ;;  %v88_v31 = vld [vmem:[#allocation6 + $0x10] sm:$0xff]  ;;  %v89_v33 = vld [vmem:[#allocation6 + $0x18] sm:$0xff]  ;;  %v90_v38 = vld [vmem:[#allocation6 + $0x20] sm:$0xff]  ;;  %vm2219_vm0 = vmmov 0   ;;  %v2220_v61 = vmov 0.0|0.0   ;;  %v133_v1 = vshrl.u32 %v132_v63, 7 }
  0x40   :  { %281 = vmatprep.subr.bf16.mxu0 %v1914_v7  ;;  %v1954_v32 = vld [vmem:[#allocation8 + $0x8] ss:$12 sps:$4 sm:$0xff]   ;;  %v95_v35 = vpack.c.bf16 %v89_v33, %v88_v31  ;;  %v2294_v36 = vld [vmem:[#allocation9 + $0x78] ss:$12 sps:$4 sm:$0xff]   ;;  %v2299_v40 = vld [vmem:[#allocation9 + $0xb0] ss:$12 sps:$4 sm:$0xff]  }
  0x41   :  { %v2291_v34 = vld [vmem:[#allocation9 + $0x7c] ss:$12 sps:$4 sm:$0xff]   ;;  %v2297_v37 = vld [vmem:[#allocation9 + $0x64] ss:$12 sps:$4 sm:$0xff]   ;;  %v2303_v42 = vld [vmem:[#allocation9 + $0x60] ss:$12 sps:$4 sm:$0xff]  }
  0x42   :  { %1713 = vmatpush3.bf16.msra.mxu1 %v1934_v16  ;;  %v91_v39 = vld [vmem:[#allocation6 + $0x28] sm:$0xff]  ;;  %v2310_v45 = vld [vmem:[#allocation9 + $0x98] ss:$12 sps:$4 sm:$0xff]   ;;  %v92_v47 = vld [vmem:[#allocation6 + $0x30] sm:$0xff]  ;;  %v134_v2 = vsub.s32 0, %v133_v1  ;;  %v138_v5 = vsub.s32 1, %v133_v1 }
  0x43   :  { %282 = vmatpush1.bf16.msra.mxu0 %v1916_v9  ;;  %1714 = vmatprep.subr.bf16.mxu1 %v1938_v18  ;;  %v96_v43 = vpack.c.bf16 %v91_v39, %v90_v38  ;;  %v2307_v44 = vld [vmem:[#allocation9 + $0x4c] ss:$12 sps:$4 sm:$0xff]   ;;  %v2314_v46 = vld [vmem:[#allocation9 + $0x48] ss:$12 sps:$4 sm:$0xff]   ;;  %v2324_v52 = vld [vmem:[#allocation9 + $0x30] ss:$12 sps:$4 sm:$0xff]  }
  0x44   :  { %283 = vmatprep.subr.bf16.mxu0 %v1917_v10  ;;  %v93_v48 = vld [vmem:[#allocation6 + $0x38] sm:$0xff]  ;;  %v2317_v49 = vld [vmem:[#allocation9 + $0x34] ss:$12 sps:$4 sm:$0xff]   ;;  %v2340_v56 = vld [vmem:[#allocation9 + $0x4] ss:$12 sps:$4 sm:$0xff]   ;;  %v142_v8 = vsub.s32 2, %v133_v1 }
  0x45   :  { %v2320_v50 = vld [vmem:[#allocation9 + $0x80] ss:$12 sps:$4 sm:$0xff]   ;;  %v97_v51 = vpack.c.bf16 %v93_v48, %v92_v47  ;;  %v2328_v53 = vld [vmem:[#allocation9 + $0x1c] ss:$12 sps:$4 sm:$0xff]   ;;  %v2337_v55 = vld [vmem:[#allocation9 + $0x18] ss:$12 sps:$4 sm:$0xff]  }
  0x46   :  { %1715 = vmatpush3.bf16.msra.mxu1 %v1938_v18  ;;  %v2331_v54 = vld [vmem:[#allocation9 + $0x68] ss:$12 sps:$4 sm:$0xff]   ;;  %v2343_v57 = vld [vmem:[#allocation9 + $0x50] ss:$12 sps:$4 sm:$0xff]   ;;  %v2347_v58 = vld [vmem:[#allocation9] ss:$12 sps:$4 sm:$0xff]  }
  0x47   :  { %284 = vmatpush1.bf16.msra.mxu0 %v1919_v14  ;;  %1716 = vmatprep.subr.bf16.mxu1 %v1942_v21  ;;  %v2352_v59 = vld [vmem:[#allocation9 + $0x38] ss:$12 sps:$4 sm:$0xff]   ;;  %v2358_v60 = vld [vmem:[#allocation9 + $0x20] ss:$12 sps:$4 sm:$0xff]   ;;  %v2365_v62 = vld [vmem:[#allocation9 + $0x8] ss:$12 sps:$4 sm:$0xff]  }
  0x48   :  { %285 = vmatprep.subr.bf16.mxu0 %v1920_v17  ;;  %v130_v3 = vld [vmem:[%s2741_s3] sm:$0x7]  ;;  %s2222_s25 = smov [#allocation12]  }
  0x49   :  { %v135_v7 = vrot.slane %v130_v3, %v134_v2  ;;  %v139_v10 = vrot.slane %v130_v3, %v138_v5  ;;  %v2409_v14 = vrot.slane %v130_v3, %v142_v8  ;;  %s1536_s26 = sshll.u32 %s2222_s25, 4  ;;  %s1537_s26 = int_to_ptr.vmem [resolvable:$true] %s1536_s26 }
  0x4a   :  { %1717 = vmatpush3.bf16.msra.mxu1 %v1942_v21 }
  0x4b   :  { %286 = vmatpush1.bf16.msra.mxu0 %v1922_v19  ;;  %1718 = vmatprep.subr.bf16.mxu1 %v1946_v24 }
  0x4c   :  { %287 = vmatprep.subr.bf16.mxu0 %v1923_v20 }
  0x4e   :  { %1719 = vmatpush3.bf16.msra.mxu1 %v1946_v24 }
  0x4f   :  { %288 = vmatpush1.bf16.msra.mxu0 %v1925_v22  ;;  %1720 = vmatprep.subr.bf16.mxu1 %v1950_v27 }
  0x50   :  { %289 = vmatprep.subr.bf16.mxu0 %v1927_v23 }
  0x52   :  { %1721 = vmatpush3.bf16.msra.mxu1 %v1950_v27 }
  0x53   :  { %290 = vmatpush1.bf16.msra.mxu0 %v1929_v25  ;;  %1722 = vmatprep.subr.bf16.mxu1 %v1954_v32 }
  0x54   :  { %605 = vmatprep.subr.bf16.mxu0 %v2279_v26 }
  0x56   :  { %308 = vmatmul.mubr.bf16.vlgmr.msra.gmra.mxu0 %v94_v15  ;;  %1723 = vmatpush3.bf16.msra.mxu1 %v1954_v32 }
  0x57   :  { %606 = vmatpush1.bf16.msra.mxu0 %v2281_v28  ;;  %317 = vmatprep.mubr.bf16.mxu0 %v2746_v0 }
  0x58   :  { %607 = vmatprep.subr.bf16.mxu0 %v2284_v29  ;;  %1732 = vmatprep.subr.bf16.mxu1 %v2748_v41 }
  0x59   :  { %1725 = vmatmul.mubr.bf16.vlgmr.msra.gmra.mxu1 %v95_v35 }
  0x5a   :  { %1733 = vmatpush3.bf16.msra.mxu1 %v2299_v40  ;;  %1728 = vmatprep.mubr.bf16.mxu1 %v96_v43 }
  0x5b   :  { %608 = vmatpush1.bf16.msra.mxu0 %v2286_v30  ;;  %1734 = vmatprep.subr.bf16.mxu1 %v2748_v41 }
  0x5c   :  { %609 = vmatprep.subr.bf16.mxu0 %v2291_v34 }
  0x5e   :  { %318 = vmatmul.mubr.bf16.gmra.mxu0 %v95_v35  ;;  %1735 = vmatpush3.bf16.msra.mxu1 %v2310_v45 }
  0x5f   :  { %610 = vmatpush1.bf16.msra.mxu0 %v2294_v36  ;;  %327 = vmatprep.mubr.bf16.mxu0 %v2746_v0 }
  0x60   :  { %611 = vmatprep.subr.bf16.mxu0 %v2297_v37  ;;  %1736 = vmatprep.subr.bf16.mxu1 %v2748_v41 }
  0x61   :  { %1729 = vmatmul.mubr.bf16.gmra.mxu1 %v97_v51 }
  0x62   :  { %1737 = vmatpush3.bf16.msra.mxu1 %v2320_v50  ;;  %1748 = vmatprep.mubr.msk.bf16.mxu1 %vm2219_vm0, %v2748_v41 }
  0x63   :  { %612 = vmatpush1.bf16.msra.mxu0 %v2303_v42  ;;  %1738 = vmatprep.subr.bf16.mxu1 %v2748_v41 }
  0x64   :  { %613 = vmatprep.subr.bf16.mxu0 %v2307_v44 }
  0x66   :  { %328 = vmatmul.mubr.bf16.gmra.mxu0 %v96_v43  ;;  %1739 = vmatpush3.bf16.msra.mxu1 %v2331_v54 }
  0x67   :  { %614 = vmatpush1.bf16.msra.mxu0 %v2314_v46  ;;  %337 = vmatprep.mubr.bf16.mxu0 %v2746_v0 }
  0x68   :  { %615 = vmatprep.subr.bf16.mxu0 %v2317_v49  ;;  %1740 = vmatprep.subr.bf16.mxu1 %v2748_v41 }
  0x6a   :  { %1741 = vmatpush3.bf16.msra.mxu1 %v2343_v57 }
  0x6b   :  { %616 = vmatpush1.bf16.msra.mxu0 %v2324_v52  ;;  %1742 = vmatprep.subr.bf16.mxu1 %v2748_v41 }
  0x6c   :  { %617 = vmatprep.subr.bf16.mxu0 %v2328_v53 }
  0x6e   :  { %338 = vmatmul.mubr.bf16.gmra.mxu0 %v97_v51  ;;  %1743 = vmatpush3.bf16.msra.mxu1 %v2352_v59 }
  0x6f   :  { %618 = vmatpush1.bf16.msra.mxu0 %v2337_v55  ;;  %637 = vmatprep.mubr.bf16.mxu0 %v2746_v0 }
  0x70   :  { %619 = vmatprep.subr.bf16.mxu0 %v2340_v56  ;;  %1744 = vmatprep.subr.bf16.mxu1 %v2748_v41 }
  0x72   :  { %1745 = vmatpush3.bf16.msra.mxu1 %v2358_v60 }
  0x73   :  { %620 = vmatpush1.bf16.msra.mxu0 %v2347_v58  ;;  %1746 = vmatprep.subr.bf16.mxu1 %v2748_v41 }
  0x74   :  { %723 = vmatprep.subr.bf16.mxu0 %v2279_v26 }
  0x76   :  { %638 = vmatmul.mubr.bf16.vlgmr.msra.gmra.mxu0 %v2220_v61  ;;  %1747 = vmatpush3.bf16.msra.mxu1 %v2365_v62 }
  0x77   :  { %724 = vmatpush1.bf16.msra.mxu0 %v2281_v28  ;;  %755 = vmatprep.mubr.bf16.mxu0 %v2746_v0 }
  0x78   :  { %725 = vmatprep.subr.bf16.mxu0 %v2284_v29  ;;  %1752 = vmatprep.subr.bf16.mxu1 %v2748_v41 }
  0x79   :  { %1749 = vmatmul.mubr.bf16.vlgmr.msra.gmra.mxu1 %v2220_v61 }
  0x7a   :  { %1753 = vmatpush3.bf16.msra.mxu1 %v2299_v40  ;;  %1768 = vmatprep.mubr.msk.bf16.mxu1 %vm2219_vm0, %v2748_v41 }
  0x7b   :  { %726 = vmatpush1.bf16.msra.mxu0 %v2286_v30  ;;  %1754 = vmatprep.subr.bf16.mxu1 %v2748_v41 }
  0x7c   :  { %727 = vmatprep.subr.bf16.mxu0 %v2291_v34 }
  0x7e   :  { %1755 = vmatpush3.bf16.msra.mxu1 %v2310_v45 }
  0x7f   :  { %728 = vmatpush1.bf16.msra.mxu0 %v2294_v36  ;;  %1756 = vmatprep.subr.bf16.mxu1 %v2748_v41 }
  0x80   :  { %729 = vmatprep.subr.bf16.mxu0 %v2297_v37 }
  0x82   :  { %1757 = vmatpush3.bf16.msra.mxu1 %v2320_v50 }
  0x83   :  { %730 = vmatpush1.bf16.msra.mxu0 %v2303_v42  ;;  %1758 = vmatprep.subr.bf16.mxu1 %v2748_v41 }
  0x84   :  { %731 = vmatprep.subr.bf16.mxu0 %v2307_v44 }
  0x86   :  { %1759 = vmatpush3.bf16.msra.mxu1 %v2331_v54 }
  0x87   :  { %732 = vmatpush1.bf16.msra.mxu0 %v2314_v46  ;;  %1760 = vmatprep.subr.bf16.mxu1 %v2748_v41 }
  0x88   :  { %733 = vmatprep.subr.bf16.mxu0 %v2317_v49 }
  0x8a   :  { %1761 = vmatpush3.bf16.msra.mxu1 %v2343_v57 }
  0x8b   :  { %734 = vmatpush1.bf16.msra.mxu0 %v2324_v52  ;;  %1762 = vmatprep.subr.bf16.mxu1 %v2748_v41 }
  0x8c   :  { %735 = vmatprep.subr.bf16.mxu0 %v2328_v53 }
  0x8e   :  { %1763 = vmatpush3.bf16.msra.mxu1 %v2352_v59 }
  0x8f   :  { %736 = vmatpush1.bf16.msra.mxu0 %v2337_v55  ;;  %1764 = vmatprep.subr.bf16.mxu1 %v2748_v41 }
  0x90   :  { %737 = vmatprep.subr.bf16.mxu0 %v2340_v56 }
  0x92   :  { %1765 = vmatpush3.bf16.msra.mxu1 %v2358_v60 }
  0x93   :  { %738 = vmatpush1.bf16.msra.mxu0 %v2347_v58  ;;  %1766 = vmatprep.subr.bf16.mxu1 %v2748_v41 }
  0x94   :  { %837 = vmatprep.subr.bf16.mxu0 %v2279_v26 }
  0x96   :  { %1767 = vmatpush3.bf16.msra.mxu1 %v2365_v62 }
  0x97   :  { %1772 = vmatprep.subr.bf16.mxu1 %v2748_v41 }
 0x116   :  { %v309_v4 = vpop.f32.mrf.mxu0 }
 0x118   :  { %v311_v6 = vpop.f32.mrf.mxu0 }
 0x119   :  { %v1726_v18 = vpop.f32.mrf.mxu1 }
 0x11a   :  { %v313_v9 = vpop.f32.mrf.mxu0  ;;  %v2416_v20 = vadd.f32 %v1726_v18, %v2409_v14 }
 0x11b   :  { %v2405_v11 = vadd.f32 %v313_v9, %v135_v7  ;;  %v382_v22 = vpop.f32.mrf.mxu1 }
 0x11c   :  { %v315_v12 = vpop.f32.mrf.mxu0 }
 0x11d   :  { %v2407_v13 = vadd.f32 %v315_v12, %v139_v10  ;;  %v1727_v25 = vpop.f32.mrf.mxu1 }
 0x11e   :  { %v319_v15 = vpop.f32.mrf.mxu0  ;;  %v2423_v31 = vadd.f32 %v1727_v25, %v2409_v14 }
 0x11f   :  { %v2411_v16 = vadd.f32 %v319_v15, %v135_v7  ;;  %v385_v33 = vpop.f32.mrf.mxu1 }
 0x120   :  { %v321_v17 = vpop.f32.mrf.mxu0  ;;  %v2428_v38 = vadd.f32 %v385_v33, %v2409_v14  ;;  %v310_v33 = vadd.f32 %v309_v4, %v135_v7 }
 0x121   :  { %v2413_v19 = vadd.f32 %v321_v17, %v139_v10  ;;  %v1730_v43 = vpop.f32.mrf.mxu1 }
 0x122   :  { %v323_v21 = vpop.f32.mrf.mxu0  ;;  %v2433_v48 = vadd.f32 %v1730_v43, %v2409_v14 }
 0x123   :  { %v2418_v23 = vadd.f32 %v323_v21, %v135_v7  ;;  %v398_v61 = vpop.f32.mrf.mxu1 }
 0x124   :  { %v325_v24 = vpop.f32.mrf.mxu0  ;;  %2750 = vst [vmem:[#allocation19_spill] sm:$0xff] %v2433_v48  ;;  %v2438_v1 = vadd.f32 %v398_v61, %v2409_v14 }
 0x125   :  { %v2420_v27 = vadd.f32 %v325_v24, %v139_v10  ;;  %v1731_v3 = vpop.f32.mrf.mxu1 }
 0x126   :  { %v329_v32 = vpop.f32.mrf.mxu0  ;;  %v2443_v8 = vadd.f32 %v1731_v3, %v2409_v14 }
 0x127   :  { %v2425_v35 = vadd.f32 %v329_v32, %v135_v7  ;;  %v401_v12 = vpop.f32.mrf.mxu1 }
 0x128   :  { %v331_v39 = vpop.f32.mrf.mxu0  ;;  %2751 = vst [vmem:[#allocation20_spill] sm:$0xff] %v2443_v8  ;;  %v2448_v17 = vadd.f32 %v401_v12, %v2409_v14 }
 0x129   :  { %v2430_v47 = vadd.f32 %v331_v39, %v139_v10 }
 0x12a   :  { %v333_v51 = vpop.f32.mrf.mxu0 }
 0x12b   :  { %v2435_v63 = vadd.f32 %v333_v51, %v135_v7 }
 0x12c   :  { %v335_v2 = vpop.f32.mrf.mxu0 }
 0x12d   :  { %v2440_v5 = vadd.f32 %v335_v2, %v139_v10 }
 0x12e   :  { %v339_v9 = vpop.f32.mrf.mxu0 }
 0x12f   :  { %v2445_v15 = vadd.f32 %v339_v9, %v135_v7  ;;  %v312_v9 = vadd.f32 %v311_v6, %v139_v10 }
 0x130   :  { %v341_v18 = vpop.f32.mrf.mxu0 }
 0x131   :  { %v2450_v21 = vadd.f32 %v341_v18, %v139_v10 }
 0x132   :  { %v343_v24 = vpop.f32.mrf.mxu0 }
 0x133   :  { %2752 = vst [vmem:[#allocation21_spill] sm:$0xff] %v2450_v21  ;;  %v2452_v25 = vadd.f32 %v343_v24, %v135_v7  ;;  %v2459_v7 = vld [vmem:[%s2743_s5] ss:$0 sm:$0xff]  ;;  %s2221_s5 = smov [#allocation11]  }
 0x134   :  { %v345_v32 = vpop.f32.mrf.mxu0  ;;  %s1523_s24 = sshll.u32 %s2221_s5, 4  ;;  %s1524_s24 = int_to_ptr.vmem [resolvable:$true] %s1523_s24 }
 0x135   :  { %2753 = vst [vmem:[#allocation22_spill] sm:$0xff] %v2452_v25  ;;  %v2454_v39 = vadd.f32 %v345_v32, %v139_v10  ;;  %v383_v10 = vadd.f32 %v382_v22, %v2409_v14  ;;  %v2754_v14 = vmov 0.0   ;;  %v2755_v22 = vmov 0   ;;  %s2159_s29 = scalar_lea.vmem %s1524_s24, 1024  ;;  %p2164_p7 = scmp.lt.s32.totalorder %s1524_s24, %s1524_s24 }
 0x136   :  { %v639_v43 = vpop.f32.mrf.mxu0  ;;  %p2160_p6 = scmp.ne.s32.totalorder %s1524_s24, %s2159_s29  ;;  %p2165_p8 = scmp.lt.s32.totalorder %s2159_s29, %s2159_s29 }
 0x137   :  { %v686_v51 = vadd.f32 %v639_v43, %v310_v33  ;;  %v2463_v43 = vld [vmem:[#allocation3] sm:$0xff] }
 0x138   :  { %v641_v61 = vpop.f32.mrf.mxu0  ;;  %vm1602_vm1 = vcmp.gt.s32.totalorder %v2463_v43, 0  ;;  %vm1605_vm3 = vcmp.gt.s32.totalorder %v2463_v43, 1  ;;  %vm1608_vm4 = vcmp.gt.s32.totalorder %v2463_v43, 2  ;;  %vm1611_vm5 = vcmp.gt.s32.totalorder %v2463_v43, 3  ;;  %p2166_p9 = por %p2165_p8, %p2164_p7 }
 0x139   :  { %v1599_v2 = vmul.f32 -1.442695, %v686_v51  ;;  %v693_v12 = vadd.f32 %v641_v61, %v312_v9  ;;  %v680_v41 = vpop.f32.mrf.mxu1  ;;  %vm2073_vm2 = vmpackc.low %vm1602_vm1, %vm1602_vm1  ;;  %vm1614_vm6 = vcmp.gt.s32.totalorder %v2463_v43, 4  ;;  %vm1617_vm7 = vcmp.gt.s32.totalorder %v2463_v43, 5 }
 0x13a   :  { %v643_v3 = vpop.f32.mrf.mxu0  ;;  %v706_v6 = vadd.f32 %v2459_v7, %v680_v41  ;;  %vm1620_vm8 = vcmp.gt.s32.totalorder %v2463_v43, 6  ;;  %vm1623_vm9 = vcmp.gt.s32.totalorder %v2463_v43, 7  ;;  %p2167_p10 = pnand %p2166_p9, %p2160_p6 }
 0x13b   :  { %1969 = vpow2.f32 %v1599_v2  ;;  %v1600_v8 = vmul.f32 -1.442695, %v693_v12  ;;  %v1750_v18 = vpop.f32.mrf.mxu1 }
 0x13c   :  { %v644_v0 = vpop.f32.mrf.mxu0 }
 0x13d   :  { %v683_v48 = vpop.f32.mrf.mxu1  ;;  %1971 = vpow2.f32 %v1600_v8 }
 0x13f   :  { %v1751_v24 = vpop.f32.mrf.mxu1 }
 0x148   :  { %v1970_v25 = vpop.eup %1969 }
 0x149   :  { %v690_v21 = vadd.f32 1.0, %v1970_v25 }
 0x14a   :  { %v1972_v4 = vpop.eup %1971 }
 0x14b   :  { %1973 = vrcp.f32 %v690_v21  ;;  %v697_v32 = vadd.f32 1.0, %v1972_v4 }
 0x14d   :  { %1975 = vrcp.f32 %v697_v32 }
 0x158   :  { %v1974_v0 = vpop.eup %1973 }
 0x159   :  { %v707_v33 = vmul.f32 %v1974_v0, %v706_v6 }
 0x15a   :  { %v1976_v8 = vpop.eup %1975 }
 0x15b   :  { %v708_v48 = vadd.f32 %v707_v33, %v383_v10  ;;  %v710_v21 = vsub.f32 1.0, %v1976_v8  ;;  %v712_v61 = vmul.f32 0.0, %v1976_v8 }
 0x15d   :  { %1977 = vtanh.f32 %v708_v48 }
 0x16a   :  { %v1978_v25 = vpop.eup %1977 }
 0x16b   :  { %v711_v51 = vmul.f32 %v1978_v25, %v710_v21 }
 0x16d   :  { %v713_v2 = vadd.f32 %v712_v61, %v711_v51 }
 0x16f   :  { %v2466_v3 = vsel %vm1602_vm1, %v713_v2, 0.0  ;;  %v2074_v41 = vpack.c.bf16 %v713_v2, %v713_v2 }
 0x170   :  { %718 = vst [vmem:[#allocation11] sm:$0xff] %v2466_v3 }
 0x171   :  { %2075 = vmatmul.mubr.msk.bf16.vlgmr.msra.gmra.mxu0 %vm2073_vm2, %v2074_v41  ;;  %2078 = vmatmul.mubr.msk.bf16.vlgmr.msra.gmra.mxu1 %vm2073_vm2, %v2074_v41 }
 0x172   :  { %838 = vmatpush1.bf16.msra.mxu0 %v2281_v28  ;;  %1773 = vmatpush3.bf16.msra.mxu1 %v2299_v40 }
 0x173   :  { %839 = vmatprep.subr.bf16.mxu0 %v2284_v29  ;;  %1774 = vmatprep.subr.bf16.mxu1 %v2754_v14 }
 0x174   :  { %869 = vmatprep.mubr.bf16.mxu0 %v2755_v22  ;;  %1788 = vmatprep.mubr.msk.bf16.mxu1 %vm2219_vm0, %v2754_v14 }
 0x176   :  { %840 = vmatpush1.bf16.msra.mxu0 %v2286_v30  ;;  %1775 = vmatpush3.bf16.msra.mxu1 %v2310_v45 }
 0x177   :  { %841 = vmatprep.subr.bf16.mxu0 %v2291_v34  ;;  %1776 = vmatprep.subr.bf16.mxu1 %v2754_v14 }
 0x17a   :  { %842 = vmatpush1.bf16.msra.mxu0 %v2294_v36  ;;  %1777 = vmatpush3.bf16.msra.mxu1 %v2320_v50 }
 0x17b   :  { %843 = vmatprep.subr.bf16.mxu0 %v2297_v37  ;;  %1778 = vmatprep.subr.bf16.mxu1 %v2754_v14 }
 0x17e   :  { %844 = vmatpush1.bf16.msra.mxu0 %v2303_v42  ;;  %1779 = vmatpush3.bf16.msra.mxu1 %v2331_v54 }
 0x17f   :  { %845 = vmatprep.subr.bf16.mxu0 %v2307_v44  ;;  %1780 = vmatprep.subr.bf16.mxu1 %v2754_v14 }
 0x182   :  { %846 = vmatpush1.bf16.msra.mxu0 %v2314_v46  ;;  %1781 = vmatpush3.bf16.msra.mxu1 %v2343_v57 }
 0x183   :  { %847 = vmatprep.subr.bf16.mxu0 %v2317_v49  ;;  %1782 = vmatprep.subr.bf16.mxu1 %v2754_v14 }
 0x186   :  { %848 = vmatpush1.bf16.msra.mxu0 %v2324_v52  ;;  %1783 = vmatpush3.bf16.msra.mxu1 %v2352_v59 }
 0x187   :  { %849 = vmatprep.subr.bf16.mxu0 %v2328_v53  ;;  %1784 = vmatprep.subr.bf16.mxu1 %v2754_v14 }
 0x18a   :  { %850 = vmatpush1.bf16.msra.mxu0 %v2337_v55  ;;  %1785 = vmatpush3.bf16.msra.mxu1 %v2358_v60 }
 0x18b   :  { %851 = vmatprep.subr.bf16.mxu0 %v2340_v56  ;;  %1786 = vmatprep.subr.bf16.mxu1 %v2754_v14 }
 0x18e   :  { %852 = vmatpush1.bf16.msra.mxu0 %v2347_v58  ;;  %1787 = vmatpush3.bf16.msra.mxu1 %v2365_v62 }
 0x18f   :  { %951 = vmatprep.subr.bf16.mxu0 %v2279_v26  ;;  %1792 = vmatprep.subr.bf16.mxu1 %v2754_v14 }
 0x231   :  { %v757_v9 = vpop.f32.mrf.mxu0  ;;  %v798_v12 = vpop.f32.mrf.mxu1 }
 0x232   :  { %v804_v18 = vadd.f32 %v757_v9, %v2405_v11  ;;  %v818_v2 = vadd.f32 %v2459_v7, %v798_v12 }
 0x233   :  { %v759_v24 = vpop.f32.mrf.mxu0  ;;  %v1770_v4 = vpop.f32.mrf.mxu1 }
 0x234   :  { %v1603_v32 = vmul.f32 -1.442695, %v804_v18  ;;  %v811_v48 = vadd.f32 %v759_v24, %v2407_v13 }
 0x235   :  { %v761_v6 = vpop.f32.mrf.mxu0  ;;  %v801_v0 = vpop.f32.mrf.mxu1 }
 0x236   :  { %1979 = vpow2.f32 %v1603_v32  ;;  %v1604_v8 = vmul.f32 -1.442695, %v811_v48 }
 0x237   :  { %v762_v10 = vpop.f32.mrf.mxu0  ;;  %v1771_v33 = vpop.f32.mrf.mxu1 }
 0x238   :  { %1981 = vpow2.f32 %v1604_v8 }
 0x243   :  { %v1980_v21 = vpop.eup %1979 }
 0x244   :  { %v808_v25 = vadd.f32 1.0, %v1980_v21 }
 0x245   :  { %v1982_v51 = vpop.eup %1981 }
 0x246   :  { %1983 = vrcp.f32 %v808_v25  ;;  %v815_v61 = vadd.f32 1.0, %v1982_v51 }
 0x248   :  { %1985 = vrcp.f32 %v815_v61 }
 0x253   :  { %v1984_v11 = vpop.eup %1983 }
 0x254   :  { %v819_v41 = vmul.f32 %v1984_v11, %v818_v2 }
 0x255   :  { %v1986_v18 = vpop.eup %1985 }
 0x256   :  { %v820_v9 = vadd.f32 %v819_v41, %v2428_v38  ;;  %v822_v4 = vsub.f32 1.0, %v1986_v18  ;;  %v824_v13 = vmul.f32 %v1986_v18, %v2466_v3 }
 0x258   :  { %1987 = vtanh.f32 %v820_v9 }
 0x265   :  { %v1988_v32 = vpop.eup %1987 }
 0x266   :  { %v823_v6 = vmul.f32 %v1988_v32, %v822_v4 }
 0x268   :  { %v825_v24 = vadd.f32 %v824_v13, %v823_v6 }
 0x26a   :  { %v2511_v0 = vsel %vm1605_vm3, %v825_v24, %v2466_v3  ;;  %v830_v10 = vsel %vm1605_vm3, %v825_v24, 0.0 }
 0x26b   :  { %832 = vst [vmem:[#allocation11 + $0x8] sm:$0xff] %v830_v10  ;;  %v836_v12 = vpack.c.bf16 %v2511_v0, %v2511_v0 }
 0x26d   :  { %870 = vmatmul.mubr.bf16.vlgmr.msra.gmra.mxu0 %v836_v12  ;;  %1789 = vmatmul.mubr.bf16.vlgmr.msra.gmra.mxu1 %v836_v12 }
 0x26e   :  { %952 = vmatpush1.bf16.msra.mxu0 %v2281_v28  ;;  %1793 = vmatpush3.bf16.msra.mxu1 %v2299_v40 }
 0x26f   :  { %953 = vmatprep.subr.bf16.mxu0 %v2284_v29  ;;  %1794 = vmatprep.subr.bf16.mxu1 %v2754_v14 }
 0x270   :  { %983 = vmatprep.mubr.bf16.mxu0 %v2755_v22  ;;  %1808 = vmatprep.mubr.msk.bf16.mxu1 %vm2219_vm0, %v2754_v14 }
 0x272   :  { %954 = vmatpush1.bf16.msra.mxu0 %v2286_v30  ;;  %1795 = vmatpush3.bf16.msra.mxu1 %v2310_v45 }
 0x273   :  { %955 = vmatprep.subr.bf16.mxu0 %v2291_v34  ;;  %1796 = vmatprep.subr.bf16.mxu1 %v2754_v14 }
 0x276   :  { %956 = vmatpush1.bf16.msra.mxu0 %v2294_v36  ;;  %1797 = vmatpush3.bf16.msra.mxu1 %v2320_v50 }
 0x277   :  { %957 = vmatprep.subr.bf16.mxu0 %v2297_v37  ;;  %1798 = vmatprep.subr.bf16.mxu1 %v2754_v14 }
 0x27a   :  { %958 = vmatpush1.bf16.msra.mxu0 %v2303_v42  ;;  %1799 = vmatpush3.bf16.msra.mxu1 %v2331_v54 }
 0x27b   :  { %959 = vmatprep.subr.bf16.mxu0 %v2307_v44  ;;  %1800 = vmatprep.subr.bf16.mxu1 %v2754_v14 }
 0x27e   :  { %960 = vmatpush1.bf16.msra.mxu0 %v2314_v46  ;;  %1801 = vmatpush3.bf16.msra.mxu1 %v2343_v57 }
 0x27f   :  { %961 = vmatprep.subr.bf16.mxu0 %v2317_v49  ;;  %1802 = vmatprep.subr.bf16.mxu1 %v2754_v14 }
 0x282   :  { %962 = vmatpush1.bf16.msra.mxu0 %v2324_v52  ;;  %1803 = vmatpush3.bf16.msra.mxu1 %v2352_v59 }
 0x283   :  { %963 = vmatprep.subr.bf16.mxu0 %v2328_v53  ;;  %1804 = vmatprep.subr.bf16.mxu1 %v2754_v14 }
 0x286   :  { %964 = vmatpush1.bf16.msra.mxu0 %v2337_v55  ;;  %1805 = vmatpush3.bf16.msra.mxu1 %v2358_v60 }
 0x287   :  { %965 = vmatprep.subr.bf16.mxu0 %v2340_v56  ;;  %1806 = vmatprep.subr.bf16.mxu1 %v2754_v14 }
 0x28a   :  { %966 = vmatpush1.bf16.msra.mxu0 %v2347_v58  ;;  %1807 = vmatpush3.bf16.msra.mxu1 %v2365_v62 }
 0x28b   :  { %1065 = vmatprep.subr.bf16.mxu0 %v2279_v26  ;;  %1812 = vmatprep.subr.bf16.mxu1 %v2754_v14 }
 0x32d   :  { %v871_v38 = vpop.f32.mrf.mxu0  ;;  %v912_v3 = vpop.f32.mrf.mxu1 }
 0x32e   :  { %v918_v33 = vadd.f32 %v871_v38, %v2411_v16  ;;  %v932_v6 = vadd.f32 %v2459_v7, %v912_v3 }
 0x32f   :  { %v873_v48 = vpop.f32.mrf.mxu0  ;;  %v1790_v8 = vpop.f32.mrf.mxu1 }
 0x330   :  { %v1606_v21 = vmul.f32 -1.442695, %v918_v33  ;;  %v925_v11 = vadd.f32 %v873_v48, %v2413_v19 }
 0x331   :  { %v875_v25 = vpop.f32.mrf.mxu0  ;;  %v915_v51 = vpop.f32.mrf.mxu1 }
 0x332   :  { %1989 = vpow2.f32 %v1606_v21  ;;  %v1607_v41 = vmul.f32 -1.442695, %v925_v11 }
 0x333   :  { %v876_v61 = vpop.f32.mrf.mxu0  ;;  %v1791_v2 = vpop.f32.mrf.mxu1 }
 0x334   :  { %1991 = vpow2.f32 %v1607_v41 }
 0x33f   :  { %v1990_v9 = vpop.eup %1989 }
 0x340   :  { %v922_v18 = vadd.f32 1.0, %v1990_v9 }
 0x341   :  { %v1992_v4 = vpop.eup %1991 }
 0x342   :  { %1993 = vrcp.f32 %v922_v18  ;;  %v929_v32 = vadd.f32 1.0, %v1992_v4 }
 0x344   :  { %1995 = vrcp.f32 %v929_v32 }
 0x34f   :  { %v1994_v16 = vpop.eup %1993 }
 0x350   :  { %v933_v13 = vmul.f32 %v1994_v16, %v932_v6 }
 0x351   :  { %v1996_v10 = vpop.eup %1995 }
 0x352   :  { %v934_v24 = vadd.f32 %v933_v13, %v2416_v20  ;;  %v936_v12 = vsub.f32 1.0, %v1996_v10  ;;  %v938_v19 = vmul.f32 %v1996_v10, %v2511_v0 }
 0x354   :  { %1997 = vtanh.f32 %v934_v24 }
 0x361   :  { %v1998_v38 = vpop.eup %1997 }
 0x362   :  { %v937_v33 = vmul.f32 %v1998_v38, %v936_v12 }
 0x364   :  { %v939_v48 = vadd.f32 %v938_v19, %v937_v33 }
 0x366   :  { %v2557_v8 = vsel %vm1608_vm4, %v939_v48, %v2511_v0  ;;  %v944_v21 = vsel %vm1608_vm4, %v939_v48, 0.0 }
 0x367   :  { %946 = vst [vmem:[#allocation11 + $0x10] sm:$0xff] %v944_v21  ;;  %v950_v3 = vpack.c.bf16 %v2557_v8, %v2557_v8 }
 0x369   :  { %984 = vmatmul.mubr.bf16.vlgmr.msra.gmra.mxu0 %v950_v3  ;;  %1809 = vmatmul.mubr.bf16.vlgmr.msra.gmra.mxu1 %v950_v3 }
 0x36a   :  { %1066 = vmatpush1.bf16.msra.mxu0 %v2281_v28  ;;  %1813 = vmatpush3.bf16.msra.mxu1 %v2299_v40 }
 0x36b   :  { %1067 = vmatprep.subr.bf16.mxu0 %v2284_v29  ;;  %1814 = vmatprep.subr.bf16.mxu1 %v2754_v14 }
 0x36c   :  { %1097 = vmatprep.mubr.bf16.mxu0 %v2755_v22  ;;  %1828 = vmatprep.mubr.msk.bf16.mxu1 %vm2219_vm0, %v2754_v14 }
 0x36e   :  { %1068 = vmatpush1.bf16.msra.mxu0 %v2286_v30  ;;  %1815 = vmatpush3.bf16.msra.mxu1 %v2310_v45 }
 0x36f   :  { %1069 = vmatprep.subr.bf16.mxu0 %v2291_v34  ;;  %1816 = vmatprep.subr.bf16.mxu1 %v2754_v14 }
 0x372   :  { %1070 = vmatpush1.bf16.msra.mxu0 %v2294_v36  ;;  %1817 = vmatpush3.bf16.msra.mxu1 %v2320_v50 }
 0x373   :  { %1071 = vmatprep.subr.bf16.mxu0 %v2297_v37  ;;  %1818 = vmatprep.subr.bf16.mxu1 %v2754_v14 }
 0x376   :  { %1072 = vmatpush1.bf16.msra.mxu0 %v2303_v42  ;;  %1819 = vmatpush3.bf16.msra.mxu1 %v2331_v54 }
 0x377   :  { %1073 = vmatprep.subr.bf16.mxu0 %v2307_v44  ;;  %1820 = vmatprep.subr.bf16.mxu1 %v2754_v14 }
 0x37a   :  { %1074 = vmatpush1.bf16.msra.mxu0 %v2314_v46  ;;  %1821 = vmatpush3.bf16.msra.mxu1 %v2343_v57 }
 0x37b   :  { %1075 = vmatprep.subr.bf16.mxu0 %v2317_v49  ;;  %1822 = vmatprep.subr.bf16.mxu1 %v2754_v14 }
 0x37e   :  { %1076 = vmatpush1.bf16.msra.mxu0 %v2324_v52  ;;  %1823 = vmatpush3.bf16.msra.mxu1 %v2352_v59 }
 0x37f   :  { %1077 = vmatprep.subr.bf16.mxu0 %v2328_v53  ;;  %1824 = vmatprep.subr.bf16.mxu1 %v2754_v14 }
 0x382   :  { %1078 = vmatpush1.bf16.msra.mxu0 %v2337_v55  ;;  %1825 = vmatpush3.bf16.msra.mxu1 %v2358_v60 }
 0x383   :  { %1079 = vmatprep.subr.bf16.mxu0 %v2340_v56  ;;  %1826 = vmatprep.subr.bf16.mxu1 %v2754_v14 }
 0x386   :  { %1080 = vmatpush1.bf16.msra.mxu0 %v2347_v58  ;;  %1827 = vmatpush3.bf16.msra.mxu1 %v2365_v62 }
 0x387   :  { %1179 = vmatprep.subr.bf16.mxu0 %v2279_v26  ;;  %1832 = vmatprep.subr.bf16.mxu1 %v2754_v14 }
 0x429   :  { %v985_v20 = vpop.f32.mrf.mxu0  ;;  %v1026_v0 = vpop.f32.mrf.mxu1 }
 0x42a   :  { %v1032_v25 = vadd.f32 %v985_v20, %v2418_v23  ;;  %v1046_v10 = vadd.f32 %v2459_v7, %v1026_v0 }
 0x42b   :  { %v987_v51 = vpop.f32.mrf.mxu0  ;;  %v1810_v61 = vpop.f32.mrf.mxu1 }
 0x42c   :  { %v1609_v2 = vmul.f32 -1.442695, %v1032_v25  ;;  %v1039_v4 = vadd.f32 %v987_v51, %v2420_v27 }
 0x42d   :  { %v989_v11 = vpop.f32.mrf.mxu0  ;;  %v1029_v41 = vpop.f32.mrf.mxu1 }
 0x42e   :  { %1999 = vpow2.f32 %v1609_v2  ;;  %v1610_v32 = vmul.f32 -1.442695, %v1039_v4 }
 0x42f   :  { %v990_v9 = vpop.f32.mrf.mxu0  ;;  %v1811_v18 = vpop.f32.mrf.mxu1 }
 0x430   :  { %2001 = vpow2.f32 %v1610_v32 }
 0x43b   :  { %v2000_v6 = vpop.eup %1999 }
 0x43c   :  { %v1036_v16 = vadd.f32 1.0, %v2000_v6 }
 0x43d   :  { %v2002_v13 = vpop.eup %2001 }
 0x43e   :  { %2003 = vrcp.f32 %v1036_v16  ;;  %v1043_v24 = vadd.f32 1.0, %v2002_v13 }
 0x440   :  { %2005 = vrcp.f32 %v1043_v24 }
 0x44b   :  { %v2004_v23 = vpop.eup %2003 }
 0x44c   :  { %v1047_v12 = vmul.f32 %v2004_v23, %v1046_v10 }
 0x44d   :  { %v2006_v33 = vpop.eup %2005 }
 0x44e   :  { %v1048_v38 = vadd.f32 %v1047_v12, %v2423_v31  ;;  %v1050_v19 = vsub.f32 1.0, %v2006_v33  ;;  %v1052_v27 = vmul.f32 %v2006_v33, %v2557_v8 }
 0x450   :  { %2007 = vtanh.f32 %v1048_v38 }
 0x45d   :  { %v2008_v48 = vpop.eup %2007 }
 0x45e   :  { %v1051_v21 = vmul.f32 %v2008_v48, %v1050_v19 }
 0x460   :  { %v1053_v3 = vadd.f32 %v1052_v27, %v1051_v21  ;;  %v2657_v27 = vld [vmem:[#allocation9 + $0x94] ss:$12 sps:$4 sm:$0xff]  }
 0x462   :  { %v2603_v20 = vsel %vm1611_vm5, %v1053_v3, %v2557_v8  ;;  %v1058_v25 = vsel %vm1611_vm5, %v1053_v3, 0.0  ;;  %v2664_v3 = vld [vmem:[#allocation9 + $0x90] ss:$12 sps:$4 sm:$0xff]  }
 0x463   :  { %1060 = vst [vmem:[#allocation11 + $0x18] sm:$0xff] %v1058_v25  ;;  %v1064_v0 = vpack.c.bf16 %v2603_v20, %v2603_v20 }
 0x465   :  { %1098 = vmatmul.mubr.bf16.vlgmr.msra.gmra.mxu0 %v1064_v0  ;;  %1829 = vmatmul.mubr.bf16.vlgmr.msra.gmra.mxu1 %v1064_v0 }
 0x466   :  { %1180 = vmatpush1.bf16.msra.mxu0 %v2281_v28  ;;  %1833 = vmatpush3.bf16.msra.mxu1 %v2299_v40 }
 0x467   :  { %1181 = vmatprep.subr.bf16.mxu0 %v2284_v29  ;;  %1834 = vmatprep.subr.bf16.mxu1 %v2754_v14 }
 0x468   :  { %1211 = vmatprep.mubr.bf16.mxu0 %v2755_v22  ;;  %1848 = vmatprep.mubr.msk.bf16.mxu1 %vm2219_vm0, %v2754_v14 }
 0x46a   :  { %1182 = vmatpush1.bf16.msra.mxu0 %v2286_v30  ;;  %1835 = vmatpush3.bf16.msra.mxu1 %v2310_v45 }
 0x46b   :  { %1183 = vmatprep.subr.bf16.mxu0 %v2291_v34  ;;  %1836 = vmatprep.subr.bf16.mxu1 %v2754_v14 }
 0x46e   :  { %1184 = vmatpush1.bf16.msra.mxu0 %v2294_v36  ;;  %1837 = vmatpush3.bf16.msra.mxu1 %v2320_v50 }
 0x46f   :  { %1185 = vmatprep.subr.bf16.mxu0 %v2297_v37  ;;  %1838 = vmatprep.subr.bf16.mxu1 %v2754_v14 }
 0x472   :  { %1186 = vmatpush1.bf16.msra.mxu0 %v2303_v42  ;;  %1839 = vmatpush3.bf16.msra.mxu1 %v2331_v54 }
 0x473   :  { %1187 = vmatprep.subr.bf16.mxu0 %v2307_v44  ;;  %1840 = vmatprep.subr.bf16.mxu1 %v2754_v14 }
 0x476   :  { %1188 = vmatpush1.bf16.msra.mxu0 %v2314_v46  ;;  %1841 = vmatpush3.bf16.msra.mxu1 %v2343_v57 }
 0x477   :  { %1189 = vmatprep.subr.bf16.mxu0 %v2317_v49  ;;  %1842 = vmatprep.subr.bf16.mxu1 %v2754_v14 }
 0x47a   :  { %1190 = vmatpush1.bf16.msra.mxu0 %v2324_v52  ;;  %1843 = vmatpush3.bf16.msra.mxu1 %v2352_v59 }
 0x47b   :  { %1191 = vmatprep.subr.bf16.mxu0 %v2328_v53  ;;  %1844 = vmatprep.subr.bf16.mxu1 %v2754_v14 }
 0x47e   :  { %1192 = vmatpush1.bf16.msra.mxu0 %v2337_v55  ;;  %1845 = vmatpush3.bf16.msra.mxu1 %v2358_v60 }
 0x47f   :  { %1193 = vmatprep.subr.bf16.mxu0 %v2340_v56  ;;  %1846 = vmatprep.subr.bf16.mxu1 %v2754_v14 }
 0x482   :  { %1194 = vmatpush1.bf16.msra.mxu0 %v2347_v58  ;;  %1847 = vmatpush3.bf16.msra.mxu1 %v2365_v62 }
 0x483   :  { %1293 = vmatprep.subr.bf16.mxu0 %v2279_v26  ;;  %1852 = vmatprep.subr.bf16.mxu1 %v2754_v14 }
 0x525   :  { %v1099_v28 = vpop.f32.mrf.mxu0  ;;  %v1140_v29 = vpop.f32.mrf.mxu1 }
 0x526   :  { %v1146_v30 = vadd.f32 %v1099_v28, %v2425_v35  ;;  %v1160_v16 = vadd.f32 %v2459_v7, %v1140_v29 }
 0x527   :  { %v1101_v31 = vpop.f32.mrf.mxu0  ;;  %v1830_v8 = vpop.f32.mrf.mxu1 }
 0x528   :  { %v1612_v51 = vmul.f32 -1.442695, %v1146_v30  ;;  %v1153_v9 = vadd.f32 %v1101_v31, %v2430_v47 }
 0x529   :  { %v1103_v61 = vpop.f32.mrf.mxu0  ;;  %v1143_v2 = vpop.f32.mrf.mxu1 }
 0x52a   :  { %2009 = vpow2.f32 %v1612_v51  ;;  %v1613_v18 = vmul.f32 -1.442695, %v1153_v9  ;;  %v2054_v51 = vld [vmem:[#allocation9 + $0x98] ss:$12 sps:$4 sm:$0xff]   ;;  %v2055_v61 = vld [vmem:[#allocation9 + $0x7c] ss:$12 sps:$4 sm:$0xff]  }
 0x52b   :  { %v1104_v11 = vpop.f32.mrf.mxu0  ;;  %v1831_v41 = vpop.f32.mrf.mxu1  ;;  %v2056_v2 = vld [vmem:[#allocation9 + $0x78] ss:$12 sps:$4 sm:$0xff]   ;;  %v2060_v9 = vld [vmem:[#allocation9 + $0x68] ss:$12 sps:$4 sm:$0xff]  }
 0x52c   :  { %2011 = vpow2.f32 %v1613_v18  ;;  %v2057_v11 = vld [vmem:[#allocation9 + $0x80] ss:$12 sps:$4 sm:$0xff]   ;;  %v2058_v41 = vld [vmem:[#allocation9 + $0x64] ss:$12 sps:$4 sm:$0xff]  }
 0x52d   :  { %v2061_v18 = vld [vmem:[#allocation9 + $0x4c] ss:$12 sps:$4 sm:$0xff]  }
 0x537   :  { %v2010_v4 = vpop.eup %2009 }
 0x538   :  { %v1150_v26 = vadd.f32 1.0, %v2010_v4  ;;  %v2062_v4 = vld [vmem:[#allocation9 + $0x48] ss:$12 sps:$4 sm:$0xff]  }
 0x539   :  { %v2012_v32 = vpop.eup %2011 }
 0x53a   :  { %2013 = vrcp.f32 %v1150_v26  ;;  %v1157_v6 = vadd.f32 1.0, %v2012_v32  ;;  %v2063_v26 = vld [vmem:[#allocation9 + $0x50] ss:$12 sps:$4 sm:$0xff]   ;;  %v2064_v32 = vld [vmem:[#allocation9 + $0x34] ss:$12 sps:$4 sm:$0xff]  }
 0x53c   :  { %2015 = vrcp.f32 %v1157_v6  ;;  %v2065_v6 = vld [vmem:[#allocation9 + $0x30] ss:$12 sps:$4 sm:$0xff]  }
 0x547   :  { %v2014_v35 = vpop.eup %2013 }
 0x548   :  { %v1161_v13 = vmul.f32 %v2014_v35, %v1160_v16  ;;  %v2066_v16 = vld [vmem:[#allocation9 + $0x38] ss:$12 sps:$4 sm:$0xff]   ;;  %v2067_v35 = vld [vmem:[#allocation9 + $0x1c] ss:$12 sps:$4 sm:$0xff]  }
 0x549   :  { %v2016_v10 = vpop.eup %2015 }
 0x54a   :  { %v1162_v24 = vadd.f32 %v1161_v13, %v2438_v1  ;;  %v1164_v23 = vsub.f32 1.0, %v2016_v10  ;;  %v1166_v47 = vmul.f32 %v2016_v10, %v2603_v20  ;;  %v2653_v1 = vld [vmem:[#allocation9 + $0xa8] ss:$12 sps:$4 sm:$0xff]   ;;  %v2068_v13 = vld [vmem:[#allocation9 + $0x18] ss:$12 sps:$4 sm:$0xff]  }
 0x54b   :  { %v2070_v10 = vld [vmem:[#allocation9 + $0x4] ss:$12 sps:$4 sm:$0xff]  }
 0x54c   :  { %2017 = vtanh.f32 %v1162_v24  ;;  %v2069_v24 = vld [vmem:[#allocation9 + $0x20] ss:$12 sps:$4 sm:$0xff]  }
 0x559   :  { %v2018_v12 = vpop.eup %2017 }
 0x55a   :  { %v1165_v38 = vmul.f32 %v2018_v12, %v1164_v23  ;;  %v2071_v23 = vld [vmem:[#allocation9] ss:$12 sps:$4 sm:$0xff]   ;;  %v2072_v12 = vld [vmem:[#allocation9 + $0x8] ss:$12 sps:$4 sm:$0xff]  }
 0x55c   :  { %v1167_v33 = vadd.f32 %v1166_v47, %v1165_v38 }
 0x55e   :  { %v2649_v19 = vsel %vm1614_vm6, %v1167_v33, %v2603_v20  ;;  %v1172_v48 = vsel %vm1614_vm6, %v1167_v33, 0.0 }
 0x55f   :  { %1174 = vst [vmem:[#allocation11 + $0x20] sm:$0xff] %v1172_v48  ;;  %v1178_v21 = vpack.c.bf16 %v2649_v19, %v2649_v19 }
 0x561   :  { %1212 = vmatmul.mubr.bf16.vlgmr.msra.gmra.mxu0 %v1178_v21  ;;  %1849 = vmatmul.mubr.bf16.vlgmr.msra.gmra.mxu1 %v1178_v21 }
 0x562   :  { %1294 = vmatpush1.bf16.msra.mxu0 %v2653_v1  ;;  %1853 = vmatpush3.bf16.msra.mxu1 %v2299_v40 }
 0x563   :  { %1295 = vmatprep.subr.bf16.mxu0 %v2657_v27  ;;  %1854 = vmatprep.subr.bf16.mxu1 %v2754_v14 }
 0x564   :  { %1325 = vmatprep.mubr.bf16.mxu0 %v2755_v22  ;;  %1868 = vmatprep.mubr.msk.bf16.mxu1 %vm2219_vm0, %v2754_v14 }
 0x566   :  { %1296 = vmatpush1.bf16.msra.mxu0 %v2664_v3  ;;  %1855 = vmatpush3.bf16.msra.mxu1 %v2310_v45 }
 0x567   :  { %1297 = vmatprep.subr.bf16.mxu0 %v2291_v34  ;;  %1856 = vmatprep.subr.bf16.mxu1 %v2754_v14  ;;  %v2052_v34 = vld [vmem:[#allocation9 + $0xac] ss:$12 sps:$4 sm:$0xff]  }
 0x56a   :  { %1298 = vmatpush1.bf16.msra.mxu0 %v2294_v36  ;;  %1857 = vmatpush3.bf16.msra.mxu1 %v2320_v50 }
 0x56b   :  { %1299 = vmatprep.subr.bf16.mxu0 %v2297_v37  ;;  %1858 = vmatprep.subr.bf16.mxu1 %v2754_v14 }
 0x56e   :  { %1300 = vmatpush1.bf16.msra.mxu0 %v2303_v42  ;;  %1859 = vmatpush3.bf16.msra.mxu1 %v2331_v54 }
 0x56f   :  { %1301 = vmatprep.subr.bf16.mxu0 %v2307_v44  ;;  %1860 = vmatprep.subr.bf16.mxu1 %v2754_v14 }
 0x572   :  { %1302 = vmatpush1.bf16.msra.mxu0 %v2314_v46  ;;  %1861 = vmatpush3.bf16.msra.mxu1 %v2343_v57 }
 0x573   :  { %1303 = vmatprep.subr.bf16.mxu0 %v2317_v49  ;;  %1862 = vmatprep.subr.bf16.mxu1 %v2754_v14 }
 0x576   :  { %1304 = vmatpush1.bf16.msra.mxu0 %v2324_v52  ;;  %1863 = vmatpush3.bf16.msra.mxu1 %v2352_v59 }
 0x577   :  { %1305 = vmatprep.subr.bf16.mxu0 %v2328_v53  ;;  %1864 = vmatprep.subr.bf16.mxu1 %v2754_v14 }
 0x57a   :  { %1306 = vmatpush1.bf16.msra.mxu0 %v2337_v55  ;;  %1865 = vmatpush3.bf16.msra.mxu1 %v2358_v60 }
 0x57b   :  { %1307 = vmatprep.subr.bf16.mxu0 %v2340_v56  ;;  %1866 = vmatprep.subr.bf16.mxu1 %v2754_v14 }
 0x57e   :  { %1308 = vmatpush1.bf16.msra.mxu0 %v2347_v58  ;;  %1867 = vmatpush3.bf16.msra.mxu1 %v2365_v62 }
 0x57f   :  { %1407 = vmatprep.subr.bf16.mxu0 %v2052_v34  ;;  %1872 = vmatprep.subr.bf16.mxu1 %v2754_v14 }
 0x621   :  { %v1213_v36 = vpop.f32.mrf.mxu0  ;;  %v1254_v37 = vpop.f32.mrf.mxu1 }
 0x622   :  { %v1260_v40 = vadd.f32 %v1213_v36, %v2435_v63  ;;  %v1274_v59 = vadd.f32 %v2459_v7, %v1254_v37  ;;  %v2756_v36 = vld [vmem:[#allocation21_spill] sm:$0xff] }
 0x623   :  { %v1215_v42 = vpop.f32.mrf.mxu0  ;;  %v1850_v44 = vpop.f32.mrf.mxu1 }
 0x624   :  { %v1615_v45 = vmul.f32 -1.442695, %v1260_v40  ;;  %v1267_v53 = vadd.f32 %v1215_v42, %v2440_v5 }
 0x625   :  { %v1217_v46 = vpop.f32.mrf.mxu0  ;;  %v1257_v49 = vpop.f32.mrf.mxu1 }
 0x626   :  { %2019 = vpow2.f32 %v1615_v45  ;;  %v1616_v54 = vmul.f32 -1.442695, %v1267_v53 }
 0x627   :  { %v1218_v50 = vpop.f32.mrf.mxu0  ;;  %v1851_v52 = vpop.f32.mrf.mxu1 }
 0x628   :  { %2021 = vpow2.f32 %v1616_v54  ;;  %v2757_v50 = vld [vmem:[#allocation19_spill] sm:$0xff] }
 0x633   :  { %v2020_v55 = vpop.eup %2019 }
 0x634   :  { %v1264_v56 = vadd.f32 1.0, %v2020_v55 }
 0x635   :  { %v2022_v57 = vpop.eup %2021 }
 0x636   :  { %2023 = vrcp.f32 %v1264_v56  ;;  %v1271_v58 = vadd.f32 1.0, %v2022_v57 }
 0x638   :  { %2025 = vrcp.f32 %v1271_v58 }
 0x643   :  { %v2024_v60 = vpop.eup %2023 }
 0x644   :  { %v1275_v62 = vmul.f32 %v2024_v60, %v1274_v59 }
 0x645   :  { %v2026_v20 = vpop.eup %2025 }
 0x646   :  { %v1276_v63 = vadd.f32 %v1275_v62, %v2448_v17  ;;  %v1278_v25 = vsub.f32 1.0, %v2026_v20  ;;  %v1280_v5 = vmul.f32 %v2026_v20, %v2649_v19  ;;  %v2053_v17 = vld [vmem:[#allocation9 + $0xb0] ss:$12 sps:$4 sm:$0xff]  }
 0x648   :  { %2027 = vtanh.f32 %v1276_v63 }
 0x655   :  { %v2028_v0 = vpop.eup %2027 }
 0x656   :  { %v1279_v28 = vmul.f32 %v2028_v0, %v1278_v25  ;;  %v2758_v25 = vld [vmem:[#allocation22_spill] sm:$0xff] }
 0x658   :  { %v1281_v29 = vadd.f32 %v1280_v5, %v1279_v28 }
 0x65a   :  { %v2700_v30 = vsel %vm1617_vm7, %v1281_v29, %v2649_v19  ;;  %v1286_v31 = vsel %vm1617_vm7, %v1281_v29, 0.0 }
 0x65b   :  { %1288 = vst [vmem:[#allocation11 + $0x28] sm:$0xff] %v1286_v31  ;;  %v1292_v8 = vpack.c.bf16 %v2700_v30, %v2700_v30 }
 0x65d   :  { %1326 = vmatmul.mubr.bf16.vlgmr.msra.gmra.mxu0 %v1292_v8  ;;  %1869 = vmatmul.mubr.bf16.vlgmr.msra.gmra.mxu1 %v1292_v8 }
 0x65e   :  { %1408 = vmatpush1.bf16.msra.mxu0 %v2653_v1  ;;  %1873 = vmatpush3.bf16.msra.mxu1 %v2053_v17 }
 0x65f   :  { %1409 = vmatprep.subr.bf16.mxu0 %v2657_v27  ;;  %1874 = vmatprep.subr.bf16.mxu1 %v2754_v14 }
 0x660   :  { %1439 = vmatprep.mubr.bf16.mxu0 %v2755_v22  ;;  %1888 = vmatprep.mubr.msk.bf16.mxu1 %vm2219_vm0, %v2754_v14  ;;  %v2059_v22 = vld [vmem:[#allocation9 + $0x60] ss:$12 sps:$4 sm:$0xff]  }
 0x662   :  { %1410 = vmatpush1.bf16.msra.mxu0 %v2664_v3  ;;  %1875 = vmatpush3.bf16.msra.mxu1 %v2054_v51 }
 0x663   :  { %1411 = vmatprep.subr.bf16.mxu0 %v2055_v61  ;;  %1876 = vmatprep.subr.bf16.mxu1 %v2754_v14 }
 0x666   :  { %1412 = vmatpush1.bf16.msra.mxu0 %v2056_v2  ;;  %1877 = vmatpush3.bf16.msra.mxu1 %v2057_v11 }
 0x667   :  { %1413 = vmatprep.subr.bf16.mxu0 %v2058_v41  ;;  %1878 = vmatprep.subr.bf16.mxu1 %v2754_v14 }
 0x66a   :  { %1414 = vmatpush1.bf16.msra.mxu0 %v2059_v22  ;;  %1879 = vmatpush3.bf16.msra.mxu1 %v2060_v9 }
 0x66b   :  { %1415 = vmatprep.subr.bf16.mxu0 %v2061_v18  ;;  %1880 = vmatprep.subr.bf16.mxu1 %v2754_v14 }
 0x66e   :  { %1416 = vmatpush1.bf16.msra.mxu0 %v2062_v4  ;;  %1881 = vmatpush3.bf16.msra.mxu1 %v2063_v26  ;;  %v2759_v26 = vld [vmem:[#allocation20_spill] sm:$0xff] }
 0x66f   :  { %1417 = vmatprep.subr.bf16.mxu0 %v2064_v32  ;;  %1882 = vmatprep.subr.bf16.mxu1 %v2754_v14 }
 0x672   :  { %1418 = vmatpush1.bf16.msra.mxu0 %v2065_v6  ;;  %1883 = vmatpush3.bf16.msra.mxu1 %v2066_v16 }
 0x673   :  { %1419 = vmatprep.subr.bf16.mxu0 %v2067_v35  ;;  %1884 = vmatprep.subr.bf16.mxu1 %v2754_v14 }
 0x676   :  { %1420 = vmatpush1.bf16.msra.mxu0 %v2068_v13  ;;  %1885 = vmatpush3.bf16.msra.mxu1 %v2069_v24 }
 0x677   :  { %1421 = vmatprep.subr.bf16.mxu0 %v2070_v10  ;;  %1886 = vmatprep.subr.bf16.mxu1 %v2754_v14 }
 0x67a   :  { %1422 = vmatpush1.bf16.msra.mxu0 %v2071_v23  ;;  %1887 = vmatpush3.bf16.msra.mxu1 %v2072_v12 }
 0x71d   :  { %v1327_v38 = vpop.f32.mrf.mxu0  ;;  %v1368_v47 = vpop.f32.mrf.mxu1 }
 0x71e   :  { %v1374_v33 = vadd.f32 %v1327_v38, %v2445_v15  ;;  %v1388_v46 = vadd.f32 %v2459_v7, %v1368_v47 }
 0x71f   :  { %v1329_v19 = vpop.f32.mrf.mxu0  ;;  %v1870_v48 = vpop.f32.mrf.mxu1 }
 0x720   :  { %v1618_v21 = vmul.f32 -1.442695, %v1374_v33  ;;  %v1381_v37 = vadd.f32 %v1329_v19, %v2756_v36 }
 0x721   :  { %v1331_v1 = vpop.f32.mrf.mxu0  ;;  %v1371_v27 = vpop.f32.mrf.mxu1 }
 0x722   :  { %2029 = vpow2.f32 %v1618_v21  ;;  %v1619_v40 = vmul.f32 -1.442695, %v1381_v37 }
 0x723   :  { %v1332_v3 = vpop.f32.mrf.mxu0  ;;  %v1871_v34 = vpop.f32.mrf.mxu1 }
 0x724   :  { %2031 = vpow2.f32 %v1619_v40 }
 0x72f   :  { %v2030_v14 = vpop.eup %2029 }
 0x730   :  { %v1378_v42 = vadd.f32 1.0, %v2030_v14 }
 0x731   :  { %v2032_v44 = vpop.eup %2031 }
 0x732   :  { %2033 = vrcp.f32 %v1378_v42  ;;  %v1385_v45 = vadd.f32 1.0, %v2032_v44 }
 0x734   :  { %2035 = vrcp.f32 %v1385_v45 }
 0x73f   :  { %v2034_v15 = vpop.eup %2033 }
 0x740   :  { %v1389_v49 = vmul.f32 %v2034_v15, %v1388_v46 }
 0x741   :  { %v2036_v53 = vpop.eup %2035 }
 0x742   :  { %v1390_v52 = vadd.f32 %v1389_v49, %v2757_v50  ;;  %v1392_v54 = vsub.f32 1.0, %v2036_v53  ;;  %v1394_v57 = vmul.f32 %v2036_v53, %v2700_v30 }
 0x744   :  { %2037 = vtanh.f32 %v1390_v52 }
 0x751   :  { %v2038_v55 = vpop.eup %2037 }
 0x752   :  { %v1393_v56 = vmul.f32 %v2038_v55, %v1392_v54 }
 0x754   :  { %v1395_v58 = vadd.f32 %v1394_v57, %v1393_v56 }
 0x756   :  { %v1399_v59 = vsel %vm1620_vm8, %v1395_v58, %v2700_v30  ;;  %v1400_v60 = vsel %vm1620_vm8, %v1395_v58, 0.0 }
 0x757   :  { %1402 = vst [vmem:[#allocation11 + $0x30] sm:$0xff] %v1400_v60  ;;  %v1406_v62 = vpack.c.bf16 %v1399_v59, %v1399_v59 }
 0x759   :  { %1440 = vmatmul.mubr.bf16.vlgmr.msra.gmra.mxu0 %v1406_v62  ;;  %1889 = vmatmul.mubr.bf16.vlgmr.msra.gmra.mxu1 %v1406_v62 }
 0x819   :  { %v1441_v63 = vpop.f32.mrf.mxu0  ;;  %v1482_v20 = vpop.f32.mrf.mxu1 }
 0x81a   :  { %v1488_v0 = vadd.f32 %v1441_v63, %v2758_v25  ;;  %v1502_v9 = vadd.f32 %v2459_v7, %v1482_v20 }
 0x81b   :  { %v1443_v28 = vpop.f32.mrf.mxu0  ;;  %v1890_v5 = vpop.f32.mrf.mxu1 }
 0x81c   :  { %v1621_v29 = vmul.f32 -1.442695, %v1488_v0  ;;  %v1495_v61 = vadd.f32 %v1443_v28, %v2454_v39 }
 0x81d   :  { %v1445_v31 = vpop.f32.mrf.mxu0  ;;  %v1485_v8 = vpop.f32.mrf.mxu1 }
 0x81e   :  { %2039 = vpow2.f32 %v1621_v29  ;;  %v1622_v30 = vmul.f32 -1.442695, %v1495_v61 }
 0x81f   :  { %v1446_v17 = vpop.f32.mrf.mxu0  ;;  %v1891_v51 = vpop.f32.mrf.mxu1 }
 0x820   :  { %2041 = vpow2.f32 %v1622_v30 }
 0x82b   :  { %v2040_v2 = vpop.eup %2039 }
 0x82c   :  { %v1492_v11 = vadd.f32 1.0, %v2040_v2 }
 0x82d   :  { %v2042_v41 = vpop.eup %2041 }
 0x82e   :  { %2043 = vrcp.f32 %v1492_v11  ;;  %v1499_v22 = vadd.f32 1.0, %v2042_v41 }
 0x830   :  { %2045 = vrcp.f32 %v1499_v22 }
 0x83b   :  { %v2044_v18 = vpop.eup %2043 }
 0x83c   :  { %v1503_v4 = vmul.f32 %v2044_v18, %v1502_v9 }
 0x83d   :  { %v2046_v6 = vpop.eup %2045 }
 0x83e   :  { %v1504_v32 = vadd.f32 %v1503_v4, %v2759_v26  ;;  %v1506_v16 = vsub.f32 1.0, %v2046_v6  ;;  %v1508_v39 = vmul.f32 %v2046_v6, %v1399_v59 }
 0x840   :  { %2047 = vtanh.f32 %v1504_v32 }
 0x84d   :  { %v2048_v35 = vpop.eup %2047 }
 0x84e   :  { %v1507_v13 = vmul.f32 %v2048_v35, %v1506_v16 }
 0x850   :  { %v1509_v24 = vadd.f32 %v1508_v39, %v1507_v13 }
 0x852   :  { %v1514_v7 = vsel %vm1623_vm9, %v1509_v24, 0.0  ;;  %v1513_v10 = vsel %vm1623_vm9, %v1509_v24, %v1399_v59 }
 0x853   :  { %1516 = vst [vmem:[#allocation11 + $0x38] sm:$0xff] %v1514_v7  ;;  %1517 = vst [vmem:[#allocation12] sm:$0xff] %v1513_v10 }
 0x854   :  { %2170 = shalt.err (!%p2167_p10)
}
 0x855   :  { %1529 = dma.vmem_to_hbm [thread:$0]  %s1524_s24, 1024, %s2744_s6, [#allocation5], %s2210_s27, %s2210_s27, %s2211_s28  }
 0x856   :  { %s2179_s9 = scalar_lea.vmem %s1537_s26, 128  ;;  %p2184_p12 = scmp.lt.s32.totalorder %s1537_s26, %s1537_s26 }
 0x857   :  { %p2180_p11 = scmp.ne.s32.totalorder %s1537_s26, %s2179_s9  ;;  %p2185_p13 = scmp.lt.s32.totalorder %s2179_s9, %s2179_s9 }
 0x859   :  { %p2186_p0 = por %p2185_p13, %p2184_p12 }
 0x85b   :  { %p2187_p1 = pnand %p2186_p0, %p2180_p11 }
 0x85d   :  { %2190 = shalt.err (!%p2187_p1)
}
 0x85e   :  { %1539 = dma.vmem_to_hbm [thread:$0]  %s1537_s26, 128, %s2745_s7, [#allocation13]  }
 0x85f   :  { %2205 = dma.done.wait [#allocation5], 1024  }
 0x860   :  { %2206 = vsyncadd [#allocation5], 4294966272 }
 0x861   :  { %2207 = dma.done.wait [#allocation13], 128  }
 0x862   :  { %2208 = vsyncadd [#allocation13], 4294967168 }
 0x863   :  { %1546 = vsyncpa [#allocation4], 1 }
 0x864   :  { %1547 = vsyncpa [#allocation7], 1 }
 0x865   :  { %1548 = vsyncpa [#allocation10], 1 }
 0x866   :  { %1549 = vsyncpa [#allocation5], 1 }
 0x867   :  { %1550 = vsyncpa [#allocation13], 1 }

</bundles_post_ra>
